<compile_context>
chip_gen: v5e
topology: v5e:2x2
jax: 0.10.0
libtpu: 0.0.40
codegen_flags: <defaults>
</compile_context>

<pallas_src>
import jax
import jax.numpy as jnp
from jax.experimental import pallas as pl
from jax.experimental.pallas import tpu as pltpu

HIDDEN = 32
INPUT_DIM = 1
NUM_LAYERS = 2
OUTPUT_DIM = 1


def lstm_kernel(xw0_ref, wa_ref, whh1_ref, b1_ref, wfc_ref, bfc_ref, out_ref):
    """xw0_ref: (T, B, 4H) = x @ wih0 + b0, time-major, precomputed.
       wa_ref:  (H, 8H)   = [whh0 | wih1] fused recurrent RHS.
       whh1_ref:(H, 4H);  b1_ref:(1, 4H);  wfc_ref:(1, H);  bfc_ref:(1, 1)."""
    T, B, _ = xw0_ref.shape
    H = HIDDEN

    # Hoist weight loads / bias broadcast out of the unrolled recurrence.
    wa = wa_ref[...]                                  # (H, 8H)
    whh1 = whh1_ref[...]                              # (H, 4H)
    b1b = jnp.broadcast_to(b1_ref[...], (B, 4 * H))   # hoisted (1,4H)->(B,4H)

    def activate(gates, c):
        # Two full-vreg EUP passes; i/f/o/g are 32-lane slices.
        # PyTorch gate order: i, f, g, o.
        sig = jax.nn.sigmoid(gates)
        th = jnp.tanh(gates)
        i = sig[:, 0 * H:1 * H]
        f = sig[:, 1 * H:2 * H]
        o = sig[:, 3 * H:4 * H]
        g = th[:, 2 * H:3 * H]
        c_new = f * c + i * g
        h_new = o * jnp.tanh(c_new)
        return h_new, c_new

    zeros_h = jnp.zeros((B, H), jnp.float32)
    rec0 = jnp.zeros((B, 4 * H), jnp.float32)   # h0(t-1) @ whh0   (h0(-1) = 0)
    rec1 = b1b                                  # h1(t-1) @ whh1 + b1 (h1(-1) = 0)
    h1 = zeros_h
    c0 = zeros_h
    c1 = zeros_h

    for t in range(T):                          # fully unrolled (T static)
        # Layer 0: input projection + bias already folded into xw0.
        gates0 = xw0_ref[t] + rec0
        h0, c0 = activate(gates0, c0)

        # Single critical-path MXU op per step: (B, H) @ (H, 8H).
        m = jnp.dot(h0, wa, preferred_element_type=jnp.float32)
        rec0 = m[:, :4 * H]                     # -> next step's layer-0 recurrence

        # Layer 1: gates = h0@wih1 (from m) + h1(t-1)@whh1 + b1 (carried).
        gates1 = m[:, 4 * H:] + rec1
        h1, c1 = activate(gates1, c1)

        # Off-critical-path: pre-compute next step's layer-1 recurrence (+bias).
        rec1 = jnp.dot(h1, whh1, preferred_element_type=jnp.float32) + b1b

    # fc on the last timestep's top-layer hidden state (== out[:, -1, :]):
    # VPU multiply + lane reduce instead of a (B,32)@(32,1) MXU matmul.
    out_ref[...] = (jnp.sum(h1 * wfc_ref[...], axis=-1, keepdims=True)
                    + bfc_ref[...])


@jax.jit
def lstm_forward(x, kparams):
    """x: (batch, seq, input_dim) float32 -> (batch, OUTPUT_DIM) float32."""
    B, T, D = x.shape
    # Hoist the layer-0 input projection (+ bias) out of the recurrence and fold
    # the time-major transpose into it: xw0[t] = x[:, t, :] @ wih0 + b0.
    xw0 = jnp.einsum("btd,dg->tbg", x, kparams["wih0"]) + kparams["b0"]

    vmem = pl.BlockSpec(memory_space=pltpu.MemorySpace.VMEM)
    return pl.pallas_call(
        lstm_kernel,
        out_shape=jax.ShapeDtypeStruct((B, OUTPUT_DIM), jnp.float32),
        in_specs=[vmem] * 6,
        out_specs=vmem,
    )(xw0, kparams["wa"], kparams["whh1"], kparams["b1"],
      kparams["wfc_row"], kparams["bfc"])


def init_params(key):
    """Deterministic init matching PyTorch parameter shapes (U(-1/sqrt(H), 1/sqrt(H)))."""
    bound = 1.0 / float(jnp.sqrt(jnp.float32(HIDDEN)))
    keys = jax.random.split(key, 10)

    def u(k, shape):
        return jax.random.uniform(k, shape, jnp.float32, -bound, bound)

    # PyTorch shapes: weight_ih_l0 (4H, D), weight_hh_l0 (4H, H), biases (4H,)
    wih0 = u(keys[0], (4 * HIDDEN, INPUT_DIM))
    whh0 = u(keys[1], (4 * HIDDEN, HIDDEN))
    bih0 = u(keys[2], (4 * HIDDEN,))
    bhh0 = u(keys[3], (4 * HIDDEN,))
    wih1 = u(keys[4], (4 * HIDDEN, HIDDEN))
    whh1 = u(keys[5], (4 * HIDDEN, HIDDEN))
    bih1 = u(keys[6], (4 * HIDDEN,))
    bhh1 = u(keys[7], (4 * HIDDEN,))
    wfc = u(keys[8], (OUTPUT_DIM, HIDDEN))
    bfc = u(keys[9], (OUTPUT_DIM,))

    # Pre-transpose so everything computes as x @ W; combine the two LSTM biases.
    return dict(
        wih0=wih0.T, whh0=whh0.T, b0=(bih0 + bhh0).reshape(1, 4 * HIDDEN),
        wih1=wih1.T, whh1=whh1.T, b1=(bih1 + bhh1).reshape(1, 4 * HIDDEN),
        wfc=wfc.T, bfc=bfc.reshape(1, OUTPUT_DIM),
    )


def fuse_params(params):
    """Kernel-ready parameter layout (done once, host side)."""
    return dict(
        wih0=params["wih0"],                                            # (D, 4H)
        b0=params["b0"],                                                # (1, 4H)
        wa=jnp.concatenate([params["whh0"], params["wih1"]], axis=1),   # (H, 8H)
        whh1=params["whh1"],                                            # (H, 4H)
        b1=params["b1"],                                                # (1, 4H)
        wfc_row=params["wfc"].T,                                        # (1, H)
        bfc=params["bfc"],                                              # (1, 1)
    )


def lstm_reference(x, params):
    """Pure-JAX reference of the same forward pass (for correctness check)."""
    B, T, D = x.shape
    H = HIDDEN

    def cell(x_t, h, c, wih, whh, b):
        gates = x_t @ wih + h @ whh + b
        i = jax.nn.sigmoid(gates[:, 0 * H:1 * H])
        f = jax.nn.sigmoid(gates[:, 1 * H:2 * H])
        g = jnp.tanh(gates[:, 2 * H:3 * H])
        o = jax.nn.sigmoid(gates[:, 3 * H:4 * H])
        c_new = f * c + i * g
        return o * jnp.tanh(c_new), c_new

    h0 = c0 = h1 = c1 = jnp.zeros((B, H), jnp.float32)
    for t in range(T):
        x_t = x[:, t, :]
        h0, c0 = cell(x_t, h0, c0, params["wih0"], params["whh0"], params["b0"])
        h1, c1 = cell(h0, h1, c1, params["wih1"], params["whh1"], params["b1"])
    return h1 @ params["wfc"] + params["bfc"]


if __name__ == "__main__":
    key = jax.random.PRNGKey(0)
    k_param, k_x = jax.random.split(key)

    params = init_params(k_param)
    kparams = fuse_params(params)

    batch, seq = 2, 8
    x = jax.random.normal(k_x, (batch, seq, INPUT_DIM), jnp.float32)

    out = lstm_forward(x, kparams)
    out = jax.block_until_ready(out)

    ref = lstm_reference(x, params)
    assert out.shape == (batch, OUTPUT_DIM)
    assert jnp.allclose(out, ref, atol=1e-5, rtol=1e-5)

    print("KERNEL_OK")
</pallas_src>

<mosaic_0001>
module attributes {stable_mosaic.version = 11 : i64} {
  func.func @lstm_kernel(%arg0: memref<8x2x128xf32, #tpu.memory_space<vmem>>, %arg1: memref<32x256xf32, #tpu.memory_space<vmem>>, %arg2: memref<32x128xf32, #tpu.memory_space<vmem>>, %arg3: memref<1x128xf32, #tpu.memory_space<vmem>>, %arg4: memref<1x32xf32, #tpu.memory_space<vmem>>, %arg5: memref<1x1xf32, #tpu.memory_space<vmem>>, %arg6: memref<2x1xf32, #tpu.memory_space<vmem>>) attributes {dimension_semantics = [], scalar_prefetch = 0 : i64, scratch_operands = 0 : i64, tpu.core_type = #tpu.core_type<tc>} {
    %c0 = arith.constant 0 : index
    %c0_0 = arith.constant 0 : index
    %0 = vector.load %arg1[%c0, %c0_0] : memref<32x256xf32, #tpu.memory_space<vmem>>, vector<32x256xf32>
    %c0_1 = arith.constant 0 : index
    %c0_2 = arith.constant 0 : index
    %1 = vector.load %arg2[%c0_1, %c0_2] : memref<32x128xf32, #tpu.memory_space<vmem>>, vector<32x128xf32>
    %c0_3 = arith.constant 0 : index
    %c0_4 = arith.constant 0 : index
    %2 = vector.load %arg3[%c0_3, %c0_4] : memref<1x128xf32, #tpu.memory_space<vmem>>, vector<1x128xf32>
    %3 = vector.shape_cast %2 : vector<1x128xf32> to vector<1x128xf32>
    %4 = vector.broadcast %3 : vector<1x128xf32> to vector<2x128xf32>
    %cst = arith.constant 0.000000e+00 : f32
    %5 = vector.broadcast %cst : f32 to vector<2x32xf32>
    %cst_5 = arith.constant 0.000000e+00 : f32
    %6 = vector.broadcast %cst_5 : f32 to vector<2x128xf32>
    %c0_6 = arith.constant 0 : index
    %c0_7 = arith.constant 0 : index
    %c0_8 = arith.constant 0 : index
    %7 = vector.load %arg0[%c0_6, %c0_7, %c0_8] : memref<8x2x128xf32, #tpu.memory_space<vmem>>, vector<1x2x128xf32>
    %8 = vector.shape_cast %7 : vector<1x2x128xf32> to vector<2x128xf32>
    %9 = arith.addf %8, %6 : vector<2x128xf32>
    %10 = arith.negf %9 : vector<2x128xf32>
    %11 = math.exp %10 : vector<2x128xf32>
    %cst_9 = arith.constant 1.000000e+00 : f32
    %12 = vector.broadcast %cst_9 : f32 to vector<2x128xf32>
    %13 = arith.addf %12, %11 : vector<2x128xf32>
    %14 = arith.divf %12, %13 : vector<2x128xf32>
    %15 = math.tanh %9 : vector<2x128xf32>
    %16 = vector.extract_strided_slice %14 {offsets = [0, 0], sizes = [2, 32], strides = [1, 1]} : vector<2x128xf32> to vector<2x32xf32>
    %17 = vector.extract_strided_slice %14 {offsets = [0, 32], sizes = [2, 32], strides = [1, 1]} : vector<2x128xf32> to vector<2x32xf32>
    %18 = vector.extract_strided_slice %14 {offsets = [0, 96], sizes = [2, 32], strides = [1, 1]} : vector<2x128xf32> to vector<2x32xf32>
    %19 = vector.extract_strided_slice %15 {offsets = [0, 64], sizes = [2, 32], strides = [1, 1]} : vector<2x128xf32> to vector<2x32xf32>
    %20 = arith.mulf %17, %5 : vector<2x32xf32>
    %21 = arith.mulf %16, %19 : vector<2x32xf32>
    %22 = arith.addf %20, %21 : vector<2x32xf32>
    %23 = math.tanh %22 : vector<2x32xf32>
    %24 = arith.mulf %18, %23 : vector<2x32xf32>
    %cst_10 = arith.constant dense<0.000000e+00> : vector<2x256xf32>
    %25 = tpu.matmul %24, %0, %cst_10 {dimension_numbers = #tpu.dot_dimension_numbers<[1], [0], [0], [1], [0, 0, 1, 1], [], []>} : vector<2x32xf32>, vector<32x256xf32>, vector<2x256xf32> -> vector<2x256xf32>
    %26 = vector.extract_strided_slice %25 {offsets = [0, 0], sizes = [2, 128], strides = [1, 1]} : vector<2x256xf32> to vector<2x128xf32>
    %27 = vector.extract_strided_slice %25 {offsets = [0, 128], sizes = [2, 128], strides = [1, 1]} : vector<2x256xf32> to vector<2x128xf32>
    %28 = arith.addf %27, %4 : vector<2x128xf32>
    %29 = arith.negf %28 : vector<2x128xf32>
    %30 = math.exp %29 : vector<2x128xf32>
    %cst_11 = arith.constant 1.000000e+00 : f32
    %31 = vector.broadcast %cst_11 : f32 to vector<2x128xf32>
    %32 = arith.addf %31, %30 : vector<2x128xf32>
    %33 = arith.divf %31, %32 : vector<2x128xf32>
    %34 = math.tanh %28 : vector<2x128xf32>
    %35 = vector.extract_strided_slice %33 {offsets = [0, 0], sizes = [2, 32], strides = [1, 1]} : vector<2x128xf32> to vector<2x32xf32>
    %36 = vector.extract_strided_slice %33 {offsets = [0, 32], sizes = [2, 32], strides = [1, 1]} : vector<2x128xf32> to vector<2x32xf32>
    %37 = vector.extract_strided_slice %33 {offsets = [0, 96], sizes = [2, 32], strides = [1, 1]} : vector<2x128xf32> to vector<2x32xf32>
    %38 = vector.extract_strided_slice %34 {offsets = [0, 64], sizes = [2, 32], strides = [1, 1]} : vector<2x128xf32> to vector<2x32xf32>
    %39 = arith.mulf %36, %5 : vector<2x32xf32>
    %40 = arith.mulf %35, %38 : vector<2x32xf32>
    %41 = arith.addf %39, %40 : vector<2x32xf32>
    %42 = math.tanh %41 : vector<2x32xf32>
    %43 = arith.mulf %37, %42 : vector<2x32xf32>
    %cst_12 = arith.constant dense<0.000000e+00> : vector<2x128xf32>
    %44 = tpu.matmul %43, %1, %cst_12 {dimension_numbers = #tpu.dot_dimension_numbers<[1], [0], [0], [1], [0, 0, 1, 1], [], []>} : vector<2x32xf32>, vector<32x128xf32>, vector<2x128xf32> -> vector<2x128xf32>
    %45 = arith.addf %44, %4 : vector<2x128xf32>
    %c1 = arith.constant 1 : index
    %c0_13 = arith.constant 0 : index
    %c0_14 = arith.constant 0 : index
    %46 = vector.load %arg0[%c1, %c0_13, %c0_14] : memref<8x2x128xf32, #tpu.memory_space<vmem>>, vector<1x2x128xf32>
    %47 = vector.shape_cast %46 : vector<1x2x128xf32> to vector<2x128xf32>
    %48 = arith.addf %47, %26 : vector<2x128xf32>
    %49 = arith.negf %48 : vector<2x128xf32>
    %50 = math.exp %49 : vector<2x128xf32>
    %cst_15 = arith.constant 1.000000e+00 : f32
    %51 = vector.broadcast %cst_15 : f32 to vector<2x128xf32>
    %52 = arith.addf %51, %50 : vector<2x128xf32>
    %53 = arith.divf %51, %52 : vector<2x128xf32>
    %54 = math.tanh %48 : vector<2x128xf32>
    %55 = vector.extract_strided_slice %53 {offsets = [0, 0], sizes = [2, 32], strides = [1, 1]} : vector<2x128xf32> to vector<2x32xf32>
    %56 = vector.extract_strided_slice %53 {offsets = [0, 32], sizes = [2, 32], strides = [1, 1]} : vector<2x128xf32> to vector<2x32xf32>
    %57 = vector.extract_strided_slice %53 {offsets = [0, 96], sizes = [2, 32], strides = [1, 1]} : vector<2x128xf32> to vector<2x32xf32>
    %58 = vector.extract_strided_slice %54 {offsets = [0, 64], sizes = [2, 32], strides = [1, 1]} : vector<2x128xf32> to vector<2x32xf32>
    %59 = arith.mulf %56, %22 : vector<2x32xf32>
    %60 = arith.mulf %55, %58 : vector<2x32xf32>
    %61 = arith.addf %59, %60 : vector<2x32xf32>
    %62 = math.tanh %61 : vector<2x32xf32>
    %63 = arith.mulf %57, %62 : vector<2x32xf32>
    %cst_16 = arith.constant dense<0.000000e+00> : vector<2x256xf32>
    %64 = tpu.matmul %63, %0, %cst_16 {dimension_numbers = #tpu.dot_dimension_numbers<[1], [0], [0], [1], [0, 0, 1, 1], [], []>} : vector<2x32xf32>, vector<32x256xf32>, vector<2x256xf32> -> vector<2x256xf32>
    %65 = vector.extract_strided_slice %64 {offsets = [0, 0], sizes = [2, 128], strides = [1, 1]} : vector<2x256xf32> to vector<2x128xf32>
    %66 = vector.extract_strided_slice %64 {offsets = [0, 128], sizes = [2, 128], strides = [1, 1]} : vector<2x256xf32> to vector<2x128xf32>
    %67 = arith.addf %66, %45 : vector<2x128xf32>
    %68 = arith.negf %67 : vector<2x128xf32>
    %69 = math.exp %68 : vector<2x128xf32>
    %cst_17 = arith.constant 1.000000e+00 : f32
    %70 = vector.broadcast %cst_17 : f32 to vector<2x128xf32>
    %71 = arith.addf %70, %69 : vector<2x128xf32>
    %72 = arith.divf %70, %71 : vector<2x128xf32>
    %73 = math.tanh %67 : vector<2x128xf32>
    %74 = vector.extract_strided_slice %72 {offsets = [0, 0], sizes = [2, 32], strides = [1, 1]} : vector<2x128xf32> to vector<2x32xf32>
    %75 = vector.extract_strided_slice %72 {offsets = [0, 32], sizes = [2, 32], strides = [1, 1]} : vector<2x128xf32> to vector<2x32xf32>
    %76 = vector.extract_strided_slice %72 {offsets = [0, 96], sizes = [2, 32], strides = [1, 1]} : vector<2x128xf32> to vector<2x32xf32>
    %77 = vector.extract_strided_slice %73 {offsets = [0, 64], sizes = [2, 32], strides = [1, 1]} : vector<2x128xf32> to vector<2x32xf32>
    %78 = arith.mulf %75, %41 : vector<2x32xf32>
    %79 = arith.mulf %74, %77 : vector<2x32xf32>
    %80 = arith.addf %78, %79 : vector<2x32xf32>
    %81 = math.tanh %80 : vector<2x32xf32>
    %82 = arith.mulf %76, %81 : vector<2x32xf32>
    %cst_18 = arith.constant dense<0.000000e+00> : vector<2x128xf32>
    %83 = tpu.matmul %82, %1, %cst_18 {dimension_numbers = #tpu.dot_dimension_numbers<[1], [0], [0], [1], [0, 0, 1, 1], [], []>} : vector<2x32xf32>, vector<32x128xf32>, vector<2x128xf32> -> vector<2x128xf32>
    %84 = arith.addf %83, %4 : vector<2x128xf32>
    %c2 = arith.constant 2 : index
    %c0_19 = arith.constant 0 : index
    %c0_20 = arith.constant 0 : index
    %85 = vector.load %arg0[%c2, %c0_19, %c0_20] : memref<8x2x128xf32, #tpu.memory_space<vmem>>, vector<1x2x128xf32>
    %86 = vector.shape_cast %85 : vector<1x2x128xf32> to vector<2x128xf32>
    %87 = arith.addf %86, %65 : vector<2x128xf32>
    %88 = arith.negf %87 : vector<2x128xf32>
    %89 = math.exp %88 : vector<2x128xf32>
    %cst_21 = arith.constant 1.000000e+00 : f32
    %90 = vector.broadcast %cst_21 : f32 to vector<2x128xf32>
    %91 = arith.addf %90, %89 : vector<2x128xf32>
    %92 = arith.divf %90, %91 : vector<2x128xf32>
    %93 = math.tanh %87 : vector<2x128xf32>
    %94 = vector.extract_strided_slice %92 {offsets = [0, 0], sizes = [2, 32], strides = [1, 1]} : vector<2x128xf32> to vector<2x32xf32>
    %95 = vector.extract_strided_slice %92 {offsets = [0, 32], sizes = [2, 32], strides = [1, 1]} : vector<2x128xf32> to vector<2x32xf32>
    %96 = vector.extract_strided_slice %92 {offsets = [0, 96], sizes = [2, 32], strides = [1, 1]} : vector<2x128xf32> to vector<2x32xf32>
    %97 = vector.extract_strided_slice %93 {offsets = [0, 64], sizes = [2, 32], strides = [1, 1]} : vector<2x128xf32> to vector<2x32xf32>
    %98 = arith.mulf %95, %61 : vector<2x32xf32>
    %99 = arith.mulf %94, %97 : vector<2x32xf32>
    %100 = arith.addf %98, %99 : vector<2x32xf32>
    %101 = math.tanh %100 : vector<2x32xf32>
    %102 = arith.mulf %96, %101 : vector<2x32xf32>
    %cst_22 = arith.constant dense<0.000000e+00> : vector<2x256xf32>
    %103 = tpu.matmul %102, %0, %cst_22 {dimension_numbers = #tpu.dot_dimension_numbers<[1], [0], [0], [1], [0, 0, 1, 1], [], []>} : vector<2x32xf32>, vector<32x256xf32>, vector<2x256xf32> -> vector<2x256xf32>
    %104 = vector.extract_strided_slice %103 {offsets = [0, 0], sizes = [2, 128], strides = [1, 1]} : vector<2x256xf32> to vector<2x128xf32>
    %105 = vector.extract_strided_slice %103 {offsets = [0, 128], sizes = [2, 128], strides = [1, 1]} : vector<2x256xf32> to vector<2x128xf32>
    %106 = arith.addf %105, %84 : vector<2x128xf32>
    %107 = arith.negf %106 : vector<2x128xf32>
    %108 = math.exp %107 : vector<2x128xf32>
    %cst_23 = arith.constant 1.000000e+00 : f32
    %109 = vector.broadcast %cst_23 : f32 to vector<2x128xf32>
    %110 = arith.addf %109, %108 : vector<2x128xf32>
    %111 = arith.divf %109, %110 : vector<2x128xf32>
    %112 = math.tanh %106 : vector<2x128xf32>
    %113 = vector.extract_strided_slice %111 {offsets = [0, 0], sizes = [2, 32], strides = [1, 1]} : vector<2x128xf32> to vector<2x32xf32>
    %114 = vector.extract_strided_slice %111 {offsets = [0, 32], sizes = [2, 32], strides = [1, 1]} : vector<2x128xf32> to vector<2x32xf32>
    %115 = vector.extract_strided_slice %111 {offsets = [0, 96], sizes = [2, 32], strides = [1, 1]} : vector<2x128xf32> to vector<2x32xf32>
    %116 = vector.extract_strided_slice %112 {offsets = [0, 64], sizes = [2, 32], strides = [1, 1]} : vector<2x128xf32> to vector<2x32xf32>
    %117 = arith.mulf %114, %80 : vector<2x32xf32>
    %118 = arith.mulf %113, %116 : vector<2x32xf32>
    %119 = arith.addf %117, %118 : vector<2x32xf32>
    %120 = math.tanh %119 : vector<2x32xf32>
    %121 = arith.mulf %115, %120 : vector<2x32xf32>
    %cst_24 = arith.constant dense<0.000000e+00> : vector<2x128xf32>
    %122 = tpu.matmul %121, %1, %cst_24 {dimension_numbers = #tpu.dot_dimension_numbers<[1], [0], [0], [1], [0, 0, 1, 1], [], []>} : vector<2x32xf32>, vector<32x128xf32>, vector<2x128xf32> -> vector<2x128xf32>
    %123 = arith.addf %122, %4 : vector<2x128xf32>
    %c3 = arith.constant 3 : index
    %c0_25 = arith.constant 0 : index
    %c0_26 = arith.constant 0 : index
    %124 = vector.load %arg0[%c3, %c0_25, %c0_26] : memref<8x2x128xf32, #tpu.memory_space<vmem>>, vector<1x2x128xf32>
    %125 = vector.shape_cast %124 : vector<1x2x128xf32> to vector<2x128xf32>
    %126 = arith.addf %125, %104 : vector<2x128xf32>
    %127 = arith.negf %126 : vector<2x128xf32>
    %128 = math.exp %127 : vector<2x128xf32>
    %cst_27 = arith.constant 1.000000e+00 : f32
    %129 = vector.broadcast %cst_27 : f32 to vector<2x128xf32>
    %130 = arith.addf %129, %128 : vector<2x128xf32>
    %131 = arith.divf %129, %130 : vector<2x128xf32>
    %132 = math.tanh %126 : vector<2x128xf32>
    %133 = vector.extract_strided_slice %131 {offsets = [0, 0], sizes = [2, 32], strides = [1, 1]} : vector<2x128xf32> to vector<2x32xf32>
    %134 = vector.extract_strided_slice %131 {offsets = [0, 32], sizes = [2, 32], strides = [1, 1]} : vector<2x128xf32> to vector<2x32xf32>
    %135 = vector.extract_strided_slice %131 {offsets = [0, 96], sizes = [2, 32], strides = [1, 1]} : vector<2x128xf32> to vector<2x32xf32>
    %136 = vector.extract_strided_slice %132 {offsets = [0, 64], sizes = [2, 32], strides = [1, 1]} : vector<2x128xf32> to vector<2x32xf32>
    %137 = arith.mulf %134, %100 : vector<2x32xf32>
    %138 = arith.mulf %133, %136 : vector<2x32xf32>
    %139 = arith.addf %137, %138 : vector<2x32xf32>
    %140 = math.tanh %139 : vector<2x32xf32>
    %141 = arith.mulf %135, %140 : vector<2x32xf32>
    %cst_28 = arith.constant dense<0.000000e+00> : vector<2x256xf32>
    %142 = tpu.matmul %141, %0, %cst_28 {dimension_numbers = #tpu.dot_dimension_numbers<[1], [0], [0], [1], [0, 0, 1, 1], [], []>} : vector<2x32xf32>, vector<32x256xf32>, vector<2x256xf32> -> vector<2x256xf32>
    %143 = vector.extract_strided_slice %142 {offsets = [0, 0], sizes = [2, 128], strides = [1, 1]} : vector<2x256xf32> to vector<2x128xf32>
    %144 = vector.extract_strided_slice %142 {offsets = [0, 128], sizes = [2, 128], strides = [1, 1]} : vector<2x256xf32> to vector<2x128xf32>
    %145 = arith.addf %144, %123 : vector<2x128xf32>
    %146 = arith.negf %145 : vector<2x128xf32>
    %147 = math.exp %146 : vector<2x128xf32>
    %cst_29 = arith.constant 1.000000e+00 : f32
    %148 = vector.broadcast %cst_29 : f32 to vector<2x128xf32>
    %149 = arith.addf %148, %147 : vector<2x128xf32>
    %150 = arith.divf %148, %149 : vector<2x128xf32>
    %151 = math.tanh %145 : vector<2x128xf32>
    %152 = vector.extract_strided_slice %150 {offsets = [0, 0], sizes = [2, 32], strides = [1, 1]} : vector<2x128xf32> to vector<2x32xf32>
    %153 = vector.extract_strided_slice %150 {offsets = [0, 32], sizes = [2, 32], strides = [1, 1]} : vector<2x128xf32> to vector<2x32xf32>
    %154 = vector.extract_strided_slice %150 {offsets = [0, 96], sizes = [2, 32], strides = [1, 1]} : vector<2x128xf32> to vector<2x32xf32>
    %155 = vector.extract_strided_slice %151 {offsets = [0, 64], sizes = [2, 32], strides = [1, 1]} : vector<2x128xf32> to vector<2x32xf32>
    %156 = arith.mulf %153, %119 : vector<2x32xf32>
    %157 = arith.mulf %152, %155 : vector<2x32xf32>
    %158 = arith.addf %156, %157 : vector<2x32xf32>
    %159 = math.tanh %158 : vector<2x32xf32>
    %160 = arith.mulf %154, %159 : vector<2x32xf32>
    %cst_30 = arith.constant dense<0.000000e+00> : vector<2x128xf32>
    %161 = tpu.matmul %160, %1, %cst_30 {dimension_numbers = #tpu.dot_dimension_numbers<[1], [0], [0], [1], [0, 0, 1, 1], [], []>} : vector<2x32xf32>, vector<32x128xf32>, vector<2x128xf32> -> vector<2x128xf32>
    %162 = arith.addf %161, %4 : vector<2x128xf32>
    %c4 = arith.constant 4 : index
    %c0_31 = arith.constant 0 : index
    %c0_32 = arith.constant 0 : index
    %163 = vector.load %arg0[%c4, %c0_31, %c0_32] : memref<8x2x128xf32, #tpu.memory_space<vmem>>, vector<1x2x128xf32>
    %164 = vector.shape_cast %163 : vector<1x2x128xf32> to vector<2x128xf32>
    %165 = arith.addf %164, %143 : vector<2x128xf32>
    %166 = arith.negf %165 : vector<2x128xf32>
    %167 = math.exp %166 : vector<2x128xf32>
    %cst_33 = arith.constant 1.000000e+00 : f32
    %168 = vector.broadcast %cst_33 : f32 to vector<2x128xf32>
    %169 = arith.addf %168, %167 : vector<2x128xf32>
    %170 = arith.divf %168, %169 : vector<2x128xf32>
    %171 = math.tanh %165 : vector<2x128xf32>
    %172 = vector.extract_strided_slice %170 {offsets = [0, 0], sizes = [2, 32], strides = [1, 1]} : vector<2x128xf32> to vector<2x32xf32>
    %173 = vector.extract_strided_slice %170 {offsets = [0, 32], sizes = [2, 32], strides = [1, 1]} : vector<2x128xf32> to vector<2x32xf32>
    %174 = vector.extract_strided_slice %170 {offsets = [0, 96], sizes = [2, 32], strides = [1, 1]} : vector<2x128xf32> to vector<2x32xf32>
    %175 = vector.extract_strided_slice %171 {offsets = [0, 64], sizes = [2, 32], strides = [1, 1]} : vector<2x128xf32> to vector<2x32xf32>
    %176 = arith.mulf %173, %139 : vector<2x32xf32>
    %177 = arith.mulf %172, %175 : vector<2x32xf32>
    %178 = arith.addf %176, %177 : vector<2x32xf32>
    %179 = math.tanh %178 : vector<2x32xf32>
    %180 = arith.mulf %174, %179 : vector<2x32xf32>
    %cst_34 = arith.constant dense<0.000000e+00> : vector<2x256xf32>
    %181 = tpu.matmul %180, %0, %cst_34 {dimension_numbers = #tpu.dot_dimension_numbers<[1], [0], [0], [1], [0, 0, 1, 1], [], []>} : vector<2x32xf32>, vector<32x256xf32>, vector<2x256xf32> -> vector<2x256xf32>
    %182 = vector.extract_strided_slice %181 {offsets = [0, 0], sizes = [2, 128], strides = [1, 1]} : vector<2x256xf32> to vector<2x128xf32>
    %183 = vector.extract_strided_slice %181 {offsets = [0, 128], sizes = [2, 128], strides = [1, 1]} : vector<2x256xf32> to vector<2x128xf32>
    %184 = arith.addf %183, %162 : vector<2x128xf32>
    %185 = arith.negf %184 : vector<2x128xf32>
    %186 = math.exp %185 : vector<2x128xf32>
    %cst_35 = arith.constant 1.000000e+00 : f32
    %187 = vector.broadcast %cst_35 : f32 to vector<2x128xf32>
    %188 = arith.addf %187, %186 : vector<2x128xf32>
    %189 = arith.divf %187, %188 : vector<2x128xf32>
    %190 = math.tanh %184 : vector<2x128xf32>
    %191 = vector.extract_strided_slice %189 {offsets = [0, 0], sizes = [2, 32], strides = [1, 1]} : vector<2x128xf32> to vector<2x32xf32>
    %192 = vector.extract_strided_slice %189 {offsets = [0, 32], sizes = [2, 32], strides = [1, 1]} : vector<2x128xf32> to vector<2x32xf32>
    %193 = vector.extract_strided_slice %189 {offsets = [0, 96], sizes = [2, 32], strides = [1, 1]} : vector<2x128xf32> to vector<2x32xf32>
    %194 = vector.extract_strided_slice %190 {offsets = [0, 64], sizes = [2, 32], strides = [1, 1]} : vector<2x128xf32> to vector<2x32xf32>
    %195 = arith.mulf %192, %158 : vector<2x32xf32>
    %196 = arith.mulf %191, %194 : vector<2x32xf32>
    %197 = arith.addf %195, %196 : vector<2x32xf32>
    %198 = math.tanh %197 : vector<2x32xf32>
    %199 = arith.mulf %193, %198 : vector<2x32xf32>
    %cst_36 = arith.constant dense<0.000000e+00> : vector<2x128xf32>
    %200 = tpu.matmul %199, %1, %cst_36 {dimension_numbers = #tpu.dot_dimension_numbers<[1], [0], [0], [1], [0, 0, 1, 1], [], []>} : vector<2x32xf32>, vector<32x128xf32>, vector<2x128xf32> -> vector<2x128xf32>
    %201 = arith.addf %200, %4 : vector<2x128xf32>
    %c5 = arith.constant 5 : index
    %c0_37 = arith.constant 0 : index
    %c0_38 = arith.constant 0 : index
    %202 = vector.load %arg0[%c5, %c0_37, %c0_38] : memref<8x2x128xf32, #tpu.memory_space<vmem>>, vector<1x2x128xf32>
    %203 = vector.shape_cast %202 : vector<1x2x128xf32> to vector<2x128xf32>
    %204 = arith.addf %203, %182 : vector<2x128xf32>
    %205 = arith.negf %204 : vector<2x128xf32>
    %206 = math.exp %205 : vector<2x128xf32>
    %cst_39 = arith.constant 1.000000e+00 : f32
    %207 = vector.broadcast %cst_39 : f32 to vector<2x128xf32>
    %208 = arith.addf %207, %206 : vector<2x128xf32>
    %209 = arith.divf %207, %208 : vector<2x128xf32>
    %210 = math.tanh %204 : vector<2x128xf32>
    %211 = vector.extract_strided_slice %209 {offsets = [0, 0], sizes = [2, 32], strides = [1, 1]} : vector<2x128xf32> to vector<2x32xf32>
    %212 = vector.extract_strided_slice %209 {offsets = [0, 32], sizes = [2, 32], strides = [1, 1]} : vector<2x128xf32> to vector<2x32xf32>
    %213 = vector.extract_strided_slice %209 {offsets = [0, 96], sizes = [2, 32], strides = [1, 1]} : vector<2x128xf32> to vector<2x32xf32>
    %214 = vector.extract_strided_slice %210 {offsets = [0, 64], sizes = [2, 32], strides = [1, 1]} : vector<2x128xf32> to vector<2x32xf32>
    %215 = arith.mulf %212, %178 : vector<2x32xf32>
    %216 = arith.mulf %211, %214 : vector<2x32xf32>
    %217 = arith.addf %215, %216 : vector<2x32xf32>
    %218 = math.tanh %217 : vector<2x32xf32>
    %219 = arith.mulf %213, %218 : vector<2x32xf32>
    %cst_40 = arith.constant dense<0.000000e+00> : vector<2x256xf32>
    %220 = tpu.matmul %219, %0, %cst_40 {dimension_numbers = #tpu.dot_dimension_numbers<[1], [0], [0], [1], [0, 0, 1, 1], [], []>} : vector<2x32xf32>, vector<32x256xf32>, vector<2x256xf32> -> vector<2x256xf32>
    %221 = vector.extract_strided_slice %220 {offsets = [0, 0], sizes = [2, 128], strides = [1, 1]} : vector<2x256xf32> to vector<2x128xf32>
    %222 = vector.extract_strided_slice %220 {offsets = [0, 128], sizes = [2, 128], strides = [1, 1]} : vector<2x256xf32> to vector<2x128xf32>
    %223 = arith.addf %222, %201 : vector<2x128xf32>
    %224 = arith.negf %223 : vector<2x128xf32>
    %225 = math.exp %224 : vector<2x128xf32>
    %cst_41 = arith.constant 1.000000e+00 : f32
    %226 = vector.broadcast %cst_41 : f32 to vector<2x128xf32>
    %227 = arith.addf %226, %225 : vector<2x128xf32>
    %228 = arith.divf %226, %227 : vector<2x128xf32>
    %229 = math.tanh %223 : vector<2x128xf32>
    %230 = vector.extract_strided_slice %228 {offsets = [0, 0], sizes = [2, 32], strides = [1, 1]} : vector<2x128xf32> to vector<2x32xf32>
    %231 = vector.extract_strided_slice %228 {offsets = [0, 32], sizes = [2, 32], strides = [1, 1]} : vector<2x128xf32> to vector<2x32xf32>
    %232 = vector.extract_strided_slice %228 {offsets = [0, 96], sizes = [2, 32], strides = [1, 1]} : vector<2x128xf32> to vector<2x32xf32>
    %233 = vector.extract_strided_slice %229 {offsets = [0, 64], sizes = [2, 32], strides = [1, 1]} : vector<2x128xf32> to vector<2x32xf32>
    %234 = arith.mulf %231, %197 : vector<2x32xf32>
    %235 = arith.mulf %230, %233 : vector<2x32xf32>
    %236 = arith.addf %234, %235 : vector<2x32xf32>
    %237 = math.tanh %236 : vector<2x32xf32>
    %238 = arith.mulf %232, %237 : vector<2x32xf32>
    %cst_42 = arith.constant dense<0.000000e+00> : vector<2x128xf32>
    %239 = tpu.matmul %238, %1, %cst_42 {dimension_numbers = #tpu.dot_dimension_numbers<[1], [0], [0], [1], [0, 0, 1, 1], [], []>} : vector<2x32xf32>, vector<32x128xf32>, vector<2x128xf32> -> vector<2x128xf32>
    %240 = arith.addf %239, %4 : vector<2x128xf32>
    %c6 = arith.constant 6 : index
    %c0_43 = arith.constant 0 : index
    %c0_44 = arith.constant 0 : index
    %241 = vector.load %arg0[%c6, %c0_43, %c0_44] : memref<8x2x128xf32, #tpu.memory_space<vmem>>, vector<1x2x128xf32>
    %242 = vector.shape_cast %241 : vector<1x2x128xf32> to vector<2x128xf32>
    %243 = arith.addf %242, %221 : vector<2x128xf32>
    %244 = arith.negf %243 : vector<2x128xf32>
    %245 = math.exp %244 : vector<2x128xf32>
    %cst_45 = arith.constant 1.000000e+00 : f32
    %246 = vector.broadcast %cst_45 : f32 to vector<2x128xf32>
    %247 = arith.addf %246, %245 : vector<2x128xf32>
    %248 = arith.divf %246, %247 : vector<2x128xf32>
    %249 = math.tanh %243 : vector<2x128xf32>
    %250 = vector.extract_strided_slice %248 {offsets = [0, 0], sizes = [2, 32], strides = [1, 1]} : vector<2x128xf32> to vector<2x32xf32>
    %251 = vector.extract_strided_slice %248 {offsets = [0, 32], sizes = [2, 32], strides = [1, 1]} : vector<2x128xf32> to vector<2x32xf32>
    %252 = vector.extract_strided_slice %248 {offsets = [0, 96], sizes = [2, 32], strides = [1, 1]} : vector<2x128xf32> to vector<2x32xf32>
    %253 = vector.extract_strided_slice %249 {offsets = [0, 64], sizes = [2, 32], strides = [1, 1]} : vector<2x128xf32> to vector<2x32xf32>
    %254 = arith.mulf %251, %217 : vector<2x32xf32>
    %255 = arith.mulf %250, %253 : vector<2x32xf32>
    %256 = arith.addf %254, %255 : vector<2x32xf32>
    %257 = math.tanh %256 : vector<2x32xf32>
    %258 = arith.mulf %252, %257 : vector<2x32xf32>
    %cst_46 = arith.constant dense<0.000000e+00> : vector<2x256xf32>
    %259 = tpu.matmul %258, %0, %cst_46 {dimension_numbers = #tpu.dot_dimension_numbers<[1], [0], [0], [1], [0, 0, 1, 1], [], []>} : vector<2x32xf32>, vector<32x256xf32>, vector<2x256xf32> -> vector<2x256xf32>
    %260 = vector.extract_strided_slice %259 {offsets = [0, 0], sizes = [2, 128], strides = [1, 1]} : vector<2x256xf32> to vector<2x128xf32>
    %261 = vector.extract_strided_slice %259 {offsets = [0, 128], sizes = [2, 128], strides = [1, 1]} : vector<2x256xf32> to vector<2x128xf32>
    %262 = arith.addf %261, %240 : vector<2x128xf32>
    %263 = arith.negf %262 : vector<2x128xf32>
    %264 = math.exp %263 : vector<2x128xf32>
    %cst_47 = arith.constant 1.000000e+00 : f32
    %265 = vector.broadcast %cst_47 : f32 to vector<2x128xf32>
    %266 = arith.addf %265, %264 : vector<2x128xf32>
    %267 = arith.divf %265, %266 : vector<2x128xf32>
    %268 = math.tanh %262 : vector<2x128xf32>
    %269 = vector.extract_strided_slice %267 {offsets = [0, 0], sizes = [2, 32], strides = [1, 1]} : vector<2x128xf32> to vector<2x32xf32>
    %270 = vector.extract_strided_slice %267 {offsets = [0, 32], sizes = [2, 32], strides = [1, 1]} : vector<2x128xf32> to vector<2x32xf32>
    %271 = vector.extract_strided_slice %267 {offsets = [0, 96], sizes = [2, 32], strides = [1, 1]} : vector<2x128xf32> to vector<2x32xf32>
    %272 = vector.extract_strided_slice %268 {offsets = [0, 64], sizes = [2, 32], strides = [1, 1]} : vector<2x128xf32> to vector<2x32xf32>
    %273 = arith.mulf %270, %236 : vector<2x32xf32>
    %274 = arith.mulf %269, %272 : vector<2x32xf32>
    %275 = arith.addf %273, %274 : vector<2x32xf32>
    %276 = math.tanh %275 : vector<2x32xf32>
    %277 = arith.mulf %271, %276 : vector<2x32xf32>
    %cst_48 = arith.constant dense<0.000000e+00> : vector<2x128xf32>
    %278 = tpu.matmul %277, %1, %cst_48 {dimension_numbers = #tpu.dot_dimension_numbers<[1], [0], [0], [1], [0, 0, 1, 1], [], []>} : vector<2x32xf32>, vector<32x128xf32>, vector<2x128xf32> -> vector<2x128xf32>
    %279 = arith.addf %278, %4 : vector<2x128xf32>
    %c7 = arith.constant 7 : index
    %c0_49 = arith.constant 0 : index
    %c0_50 = arith.constant 0 : index
    %280 = vector.load %arg0[%c7, %c0_49, %c0_50] : memref<8x2x128xf32, #tpu.memory_space<vmem>>, vector<1x2x128xf32>
    %281 = vector.shape_cast %280 : vector<1x2x128xf32> to vector<2x128xf32>
    %282 = arith.addf %281, %260 : vector<2x128xf32>
    %283 = arith.negf %282 : vector<2x128xf32>
    %284 = math.exp %283 : vector<2x128xf32>
    %cst_51 = arith.constant 1.000000e+00 : f32
    %285 = vector.broadcast %cst_51 : f32 to vector<2x128xf32>
    %286 = arith.addf %285, %284 : vector<2x128xf32>
    %287 = arith.divf %285, %286 : vector<2x128xf32>
    %288 = math.tanh %282 : vector<2x128xf32>
    %289 = vector.extract_strided_slice %287 {offsets = [0, 0], sizes = [2, 32], strides = [1, 1]} : vector<2x128xf32> to vector<2x32xf32>
    %290 = vector.extract_strided_slice %287 {offsets = [0, 32], sizes = [2, 32], strides = [1, 1]} : vector<2x128xf32> to vector<2x32xf32>
    %291 = vector.extract_strided_slice %287 {offsets = [0, 96], sizes = [2, 32], strides = [1, 1]} : vector<2x128xf32> to vector<2x32xf32>
    %292 = vector.extract_strided_slice %288 {offsets = [0, 64], sizes = [2, 32], strides = [1, 1]} : vector<2x128xf32> to vector<2x32xf32>
    %293 = arith.mulf %290, %256 : vector<2x32xf32>
    %294 = arith.mulf %289, %292 : vector<2x32xf32>
    %295 = arith.addf %293, %294 : vector<2x32xf32>
    %296 = math.tanh %295 : vector<2x32xf32>
    %297 = arith.mulf %291, %296 : vector<2x32xf32>
    %cst_52 = arith.constant dense<0.000000e+00> : vector<2x256xf32>
    %298 = tpu.matmul %297, %0, %cst_52 {dimension_numbers = #tpu.dot_dimension_numbers<[1], [0], [0], [1], [0, 0, 1, 1], [], []>} : vector<2x32xf32>, vector<32x256xf32>, vector<2x256xf32> -> vector<2x256xf32>
    %299 = vector.extract_strided_slice %298 {offsets = [0, 128], sizes = [2, 128], strides = [1, 1]} : vector<2x256xf32> to vector<2x128xf32>
    %300 = arith.addf %299, %279 : vector<2x128xf32>
    %301 = arith.negf %300 : vector<2x128xf32>
    %302 = math.exp %301 : vector<2x128xf32>
    %cst_53 = arith.constant 1.000000e+00 : f32
    %303 = vector.broadcast %cst_53 : f32 to vector<2x128xf32>
    %304 = arith.addf %303, %302 : vector<2x128xf32>
    %305 = arith.divf %303, %304 : vector<2x128xf32>
    %306 = math.tanh %300 : vector<2x128xf32>
    %307 = vector.extract_strided_slice %305 {offsets = [0, 0], sizes = [2, 32], strides = [1, 1]} : vector<2x128xf32> to vector<2x32xf32>
    %308 = vector.extract_strided_slice %305 {offsets = [0, 32], sizes = [2, 32], strides = [1, 1]} : vector<2x128xf32> to vector<2x32xf32>
    %309 = vector.extract_strided_slice %305 {offsets = [0, 96], sizes = [2, 32], strides = [1, 1]} : vector<2x128xf32> to vector<2x32xf32>
    %310 = vector.extract_strided_slice %306 {offsets = [0, 64], sizes = [2, 32], strides = [1, 1]} : vector<2x128xf32> to vector<2x32xf32>
    %311 = arith.mulf %308, %275 : vector<2x32xf32>
    %312 = arith.mulf %307, %310 : vector<2x32xf32>
    %313 = arith.addf %311, %312 : vector<2x32xf32>
    %314 = math.tanh %313 : vector<2x32xf32>
    %315 = arith.mulf %309, %314 : vector<2x32xf32>
    %c0_54 = arith.constant 0 : index
    %c0_55 = arith.constant 0 : index
    %316 = vector.load %arg4[%c0_54, %c0_55] : memref<1x32xf32, #tpu.memory_space<vmem>>, vector<1x32xf32>
    %317 = vector.broadcast %316 : vector<1x32xf32> to vector<2x32xf32>
    %318 = arith.mulf %315, %317 : vector<2x32xf32>
    %cst_56 = arith.constant dense<0.000000e+00> : vector<2xf32>
    %319 = vector.multi_reduction <add>, %318, %cst_56 [1] : vector<2x32xf32> to vector<2xf32>
    %320 = vector.shape_cast %319 : vector<2xf32> to vector<2x1xf32>
    %c0_57 = arith.constant 0 : index
    %c0_58 = arith.constant 0 : index
    %321 = vector.load %arg5[%c0_57, %c0_58] : memref<1x1xf32, #tpu.memory_space<vmem>>, vector<1x1xf32>
    %322 = vector.broadcast %321 : vector<1x1xf32> to vector<2x1xf32>
    %323 = arith.addf %320, %322 : vector<2x1xf32>
    %c0_59 = arith.constant 0 : index
    %c0_60 = arith.constant 0 : index
    %324 = vector.load %arg6[%c0_59, %c0_60] : memref<2x1xf32, #tpu.memory_space<vmem>>, vector<2x1xf32>
    tpu.vector_store %arg6[%c0_59, %c0_60], %323 {strides = array<i32>} : memref<2x1xf32, #tpu.memory_space<vmem>>, vector<2x1xf32>,
    return
  }
}

</mosaic_0001>

<bundles_post_ra>
// kernel: lstm_forward.1
= control target key start
LH: loop header
LB: loop body
LE: loop exit
PB: predicated region body
PF: predicated region fallthrough
CT: control target
= control target key end

     0   :  { %s1829_s0 = inlined_call_operand.vmem [shape: f32[8,2,128], index: 0, kind: input, shape index: {}]   ;;  %s1830_s1 = inlined_call_operand.hbm [shape: f32[32,256], index: 1, kind: input, shape index: {}]   ;;  %s1831_s2 = inlined_call_operand.hbm [shape: f32[32,128], index: 2, kind: input, shape index: {}]   ;;  %s1832_s3 = inlined_call_operand.vmem [shape: f32[1,128], index: 3, kind: input, shape index: {}]   ;;  %s1833_s4 = inlined_call_operand.vmem [shape: f32[1,32], index: 4, kind: input, shape index: {}]   ;;  %s1834_s5 = inlined_call_operand.<no memory space> [shape: f32[1,1], index: 5, kind: input, shape index: {}]   ;;  %s1835_s6 = inlined_call_operand.vmem [shape: f32[2,1], index: 6, kind: output, shape index: {}]  }
   0x1   :  { %v11_v0 = vstv %s1834_s5 }
   0x2   :  { %12 = vst [vmem:[#allocation2] sm:$0x1] %v11_v0 }
   0x3   :  { %13 = vsyncpa [#allocation4], 0  ;;  %s21_s25 = sshll.u32 %s1830_s1, 4  ;;  %s22_s25 = int_to_ptr.hbm [resolvable:$true] %s21_s25 }
   0x4   :  { %14 = vsyncpa [#allocation6], 0  ;;  %s1478_s26 = smov [#allocation3]   ;;  %s34_s30 = sshll.u32 %s1831_s2, 4  ;;  %s35_s30 = int_to_ptr.hbm [resolvable:$true] %s34_s30 }
   0x5   :  { %s23_s27 = sshll.u32 %s1478_s26, 4  ;;  %s1479_s7 = smov 256   ;;  %s24_s27 = int_to_ptr.vmem [resolvable:$true] %s23_s27 }
   0x6   :  { %s1480_s8 = smov 16   ;;  %s1481_s5 = smov [#allocation5]  }
   0x7   :  { %29 = dma.hbm_to_vmem [thread:$0]  %s22_s25, 1024, %s24_s27, [#allocation4], %s1479_s7, %s1479_s7, %s1480_s8  }
   0x8   :  { %s36_s9 = sshll.u32 %s1481_s5, 4  ;;  %s1482_s10 = smov 128   ;;  %s37_s9 = int_to_ptr.vmem [resolvable:$true] %s36_s9 }
   0x9   :  { %s1483_s11 = smov 8  }
   0xa   :  { %42 = dma.hbm_to_vmem [thread:$0]  %s35_s30, 512, %s37_s9, [#allocation6], %s1482_s10, %s1482_s10, %s1483_s11  }
   0xb   :  { %1474 = dma.done.wait [#allocation4], 1024  }
   0xc   :  { %1475 = vsyncadd [#allocation4], 4294966272 }
   0xd   :  { %1476 = dma.done.wait [#allocation6], 512  }
   0xe   :  { %1477 = vsyncadd [#allocation6], 4294966784  ;;  %v73_v1 = vld [vmem:[%s1829_s0] sm:$0x3]  ;;  %s1484_s2 = smov 64   ;;  %s1485_s13 = smov 32  }
   0xf   :  { %1297 = vtanh.f32 %v73_v1  ;;  %v1240_v3 = vmul.f32 -1.442695, %v73_v1  ;;  %v1540_v22 = vld [vmem:[#allocation3 + $0x30] sm:$0xff]  ;;  %v1542_v23 = vld [vmem:[#allocation3 + $0x38] sm:$0xff]  ;;  %v1544_v24 = vld [vmem:[#allocation3 + $0x20] sm:$0xff]  ;;  %vm115_vm4 = vcmask 261120  }
  0x10   :  { %130 = vmatpush.msra.mxu0 %v1540_v22  ;;  %150 = vmatpush.msra.mxu1 %v1542_v23  ;;  %v1548_v25 = vld [vmem:[#allocation3 + $0x28] sm:$0xff]  ;;  %v1550_v26 = vld [vmem:[#allocation3 + $0x10] sm:$0xff]  ;;  %v1552_v27 = vld [vmem:[#allocation3 + $0x18] sm:$0xff]  ;;  %s1486_s8 = smov 96  }
  0x11   :  { %1299 = vpow2.f32 %v1240_v3  ;;  %278 = vmatpush.msra.mxu3 %v1540_v22  ;;  %v1562_v30 = vld [vmem:[#allocation3] sm:$0xff]  ;;  %v1564_v31 = vld [vmem:[#allocation3 + $0x8] sm:$0xff]  ;;  %v1585_v36 = vld [vmem:[%s1832_s3] ss:$0 sm:$0xff] }
  0x12   :  { %131 = vmatpush.msra.mxu0 %v1544_v24  ;;  %151 = vmatpush.msra.mxu1 %v1548_v25  ;;  %v1245_v33 = vld [vmem:[%s1829_s0 + $0x2] sm:$0x3] }
  0x13   :  { %279 = vmatpush.msra.mxu3 %v1544_v24 }
  0x14   :  { %132 = vmatpush.msra.mxu0 %v1550_v26  ;;  %152 = vmatpush.msra.mxu1 %v1552_v27 }
  0x15   :  { %v1298_v2 = vpop.eup %1297  ;;  %280 = vmatpush.msra.mxu3 %v1550_v26 }
  0x16   :  { %97 = vrot.lane.b32.xlu0 %v1298_v2, %s1484_s2  ;;  %133 = vmatpush.msra.mxu0 %v1562_v30 }
  0x17   :  { %v1300_v4 = vpop.eup %1299  ;;  %153 = vmatpush.msra.mxu1 %v1564_v31  ;;  %281 = vmatpush.msra.mxu3 %v1562_v30 }
  0x18   :  { %v78_v5 = vadd.f32 1.0, %v1300_v4  ;;  %298 = vmatpush.msrb.mxu0 %v1542_v23 }
  0x19   :  { %446 = vmatpush.msrb.mxu3 %v1542_v23 }
  0x1a   :  { %1301 = vrcp.f32 %v78_v5  ;;  %vm84_vm0 = vweird.f32 %v78_v5  ;;  %v90_v10 = vand.u32 2147483648, %v78_v5  ;;  %v88_v12 = vand.u32 2147483647, %v78_v5  ;;  %299 = vmatpush.msrb.mxu0 %v1548_v25 }
  0x1b   :  { %447 = vmatpush.msrb.mxu3 %v1548_v25 }
  0x1c   :  { %v91_v13 = vor.u32 1.1754944e-38, %v90_v10  ;;  %vm89_vm3 = vcmp.eq.f32.partialorder %v88_v12, 8.507059e+37  ;;  %300 = vmatpush.msrb.mxu0 %v1552_v27 }
  0x1d   :  { %448 = vmatpush.msrb.mxu3 %v1552_v27 }
  0x1e   :  { %301 = vmatpush.msrb.mxu0 %v1564_v31 }
  0x1f   :  { %449 = vmatpush.msrb.mxu3 %v1564_v31 }
  0x20   :  { %v1302_v6 = vpop.eup %1301 }
  0x21   :  { %v80_v7 = vmul.f32 %v1302_v6, %v78_v5  ;;  %vm85_vm1 = vweird.f32 %v1302_v6 }
  0x22   :  { %vm86_vm2 = vmor %vm84_vm0, %vm85_vm1 }
  0x23   :  { %v81_v8 = vsub.f32 1.0, %v80_v7 }
  0x25   :  { %v82_v9 = vmul.f32 %v1302_v6, %v81_v8 }
  0x27   :  { %v83_v11 = vadd.f32 %v1302_v6, %v82_v9 }
  0x29   :  { %v87_v14 = vsel %vm86_vm2, %v1302_v6, %v83_v11 }
  0x2a   :  { %v92_v15 = vsel %vm89_vm3, %v91_v13, %v87_v14 }
  0x2b   :  { %v95_v18 = vmul.f32 0.0, %v92_v15 }
  0x88   :  { %v98_v16 = vpop.permute.xlu0 %97 }
  0x89   :  { %v100_v17 = vmul.f32 %v98_v16, %v92_v15 }
  0x8b   :  { %102 = vrot.lane.b32.xlu0 %v100_v17, %s1485_s13 }
  0xfd   :  { %v103_v19 = vpop.permute.xlu0 %102 }
  0xfe   :  { %v1536_v20 = vadd.f32 %v103_v19, %v95_v18  ;;  %v1603_v19 = vld [vmem:[#allocation5 + $0x18] sm:$0xff] }
  0xff   :  { %213 = vmatpush.msra.mxu2 %v1603_v19  ;;  %361 = vmatpush.msrb.mxu1 %v1603_v19 }
 0x100   :  { %1303 = vtanh.f32 %v1536_v20 }
 0x106   :  { %v1304_v21 = vpop.eup %1303 }
 0x107   :  { %108 = vrot.lane.b32.xlu1 %v1304_v21, %s1484_s2  ;;  %v1609_v21 = vld [vmem:[#allocation5 + $0x8] sm:$0xff] }
 0x179   :  { %v109_v28 = vpop.permute.xlu1 %108 }
 0x17a   :  { %v111_v29 = vmul.f32 %v109_v28, %v92_v15  ;;  %v1614_v28 = vld [vmem:[#allocation5] sm:$0xff] }
 0x17c   :  { %113 = vrot.lane.b32.xlu1 %v111_v29, %s1485_s13 }
 0x1ee   :  { %v114_v32 = vpop.permute.xlu1 %113 }
 0x1ef   :  { %1241 = vmatmul.msk.f32.vlgmr.msra.gmra.mxu0 %vm115_vm4, %v114_v32  ;;  %1242 = vmatmul.msk.f32.vlgmr.msra.gmra.mxu1 %vm115_vm4, %v114_v32 }
 0x1f0   :  { %509 = vmatpush.msra.mxu0 %v1603_v19 }
 0x26c   :  { %v135_v34 = vpop.f32.mrf.mxu0  ;;  %v155_v37 = vpop.f32.mrf.mxu1 }
 0x26d   :  { %v223_v35 = vadd.f32 %v1245_v33, %v135_v34  ;;  %v158_v38 = vadd.f32 %v1585_v36, %v155_v37  ;;  %v1251_v33 = vld [vmem:[%s1829_s0 + $0x4] sm:$0x3] }
 0x26f   :  { %1305 = vtanh.f32 %v223_v35  ;;  %v1246_v41 = vmul.f32 -1.442695, %v223_v35  ;;  %v1243_v42 = vmul.f32 -1.442695, %v158_v38 }
 0x270   :  { %1307 = vtanh.f32 %v158_v38 }
 0x271   :  { %1309 = vpow2.f32 %v1246_v41 }
 0x272   :  { %1311 = vpow2.f32 %v1243_v42 }
 0x275   :  { %v1306_v39 = vpop.eup %1305 }
 0x276   :  { %246 = vrot.lane.b32.xlu2 %v1306_v39, %s1484_s2  ;;  %v1308_v40 = vpop.eup %1307 }
 0x277   :  { %v1310_v43 = vpop.eup %1309 }
 0x278   :  { %v227_v44 = vadd.f32 1.0, %v1310_v43  ;;  %v1312_v45 = vpop.eup %1311 }
 0x279   :  { %v162_v46 = vadd.f32 1.0, %v1312_v45 }
 0x27a   :  { %1313 = vrcp.f32 %v227_v44  ;;  %v239_v55 = vand.u32 2147483648, %v227_v44  ;;  %vm233_vm6 = vweird.f32 %v227_v44  ;;  %v237_v56 = vand.u32 2147483647, %v227_v44 }
 0x27b   :  { %1315 = vrcp.f32 %v162_v46  ;;  %v174_v0 = vand.u32 2147483648, %v162_v46  ;;  %vm168_vm10 = vweird.f32 %v162_v46  ;;  %v172_v1 = vand.u32 2147483647, %v162_v46 }
 0x27c   :  { %v240_v59 = vor.u32 1.1754944e-38, %v239_v55  ;;  %vm238_vm8 = vcmp.eq.f32.partialorder %v237_v56, 8.507059e+37 }
 0x27d   :  { %v175_v3 = vor.u32 1.1754944e-38, %v174_v0  ;;  %vm173_vm12 = vcmp.eq.f32.partialorder %v172_v1, 8.507059e+37 }
 0x27e   :  { %181 = vrot.lane.b32.xlu2 %v1308_v40, %s1484_s2 }
 0x280   :  { %v1314_v47 = vpop.eup %1313 }
 0x281   :  { %v229_v48 = vmul.f32 %v1314_v47, %v227_v44  ;;  %v1316_v50 = vpop.eup %1315  ;;  %vm234_vm5 = vweird.f32 %v1314_v47 }
 0x282   :  { %v164_v52 = vmul.f32 %v1316_v50, %v162_v46  ;;  %vm235_vm7 = vmor %vm233_vm6, %vm234_vm5  ;;  %vm169_vm9 = vweird.f32 %v1316_v50 }
 0x283   :  { %v230_v49 = vsub.f32 1.0, %v229_v48  ;;  %vm170_vm11 = vmor %vm168_vm10, %vm169_vm9 }
 0x284   :  { %v165_v54 = vsub.f32 1.0, %v164_v52 }
 0x285   :  { %v231_v51 = vmul.f32 %v1314_v47, %v230_v49 }
 0x286   :  { %v166_v58 = vmul.f32 %v1316_v50, %v165_v54 }
 0x287   :  { %v232_v53 = vadd.f32 %v1314_v47, %v231_v51 }
 0x288   :  { %v167_v63 = vadd.f32 %v1316_v50, %v166_v58 }
 0x289   :  { %v236_v57 = vsel %vm235_vm7, %v1314_v47, %v232_v53 }
 0x28a   :  { %v241_v61 = vsel %vm238_vm8, %v240_v59, %v236_v57  ;;  %v171_v2 = vsel %vm170_vm11, %v1316_v50, %v167_v63 }
 0x28b   :  { %v176_v4 = vsel %vm173_vm12, %v175_v3, %v171_v2  ;;  %v244_v7 = vmul.f32 %v241_v61, %v1536_v20  ;;  %v1605_v20 = vld [vmem:[#allocation5 + $0x10] sm:$0xff] }
 0x28c   :  { %v179_v10 = vmul.f32 0.0, %v176_v4  ;;  %214 = vmatpush.msra.mxu2 %v1605_v20  ;;  %362 = vmatpush.msrb.mxu1 %v1605_v20 }
 0x28d   :  { %510 = vmatpush.msra.mxu0 %v1605_v20 }
 0x28e   :  { %215 = vmatpush.msra.mxu2 %v1609_v21  ;;  %363 = vmatpush.msrb.mxu1 %v1609_v21 }
 0x28f   :  { %511 = vmatpush.msra.mxu0 %v1609_v21 }
 0x290   :  { %216 = vmatpush.msra.mxu2 %v1614_v28  ;;  %364 = vmatpush.msrb.mxu1 %v1614_v28 }
 0x291   :  { %512 = vmatpush.msra.mxu0 %v1614_v28 }
 0x292   :  { %426 = vmatpush.msrb.mxu2 %v1540_v22  ;;  %574 = vmatpush.msra.mxu1 %v1540_v22 }
 0x294   :  { %427 = vmatpush.msrb.mxu2 %v1544_v24  ;;  %575 = vmatpush.msra.mxu1 %v1544_v24 }
 0x296   :  { %428 = vmatpush.msrb.mxu2 %v1550_v26  ;;  %576 = vmatpush.msra.mxu1 %v1550_v26 }
 0x298   :  { %429 = vmatpush.msrb.mxu2 %v1562_v30  ;;  %577 = vmatpush.msra.mxu1 %v1562_v30 }
 0x2d0   :  { %v247_v60 = vpop.permute.xlu2 %246 }
 0x2d1   :  { %v249_v62 = vmul.f32 %v247_v60, %v241_v61 }
 0x2d3   :  { %251 = vrot.lane.b32.xlu0 %v249_v62, %s1485_s13 }
 0x2d8   :  { %v182_v5 = vpop.permute.xlu2 %181 }
 0x2d9   :  { %v184_v6 = vmul.f32 %v182_v5, %v176_v4 }
 0x2db   :  { %186 = vrot.lane.b32.xlu1 %v184_v6, %s1485_s13 }
 0x345   :  { %v252_v8 = vpop.permute.xlu0 %251 }
 0x346   :  { %v1593_v9 = vadd.f32 %v252_v8, %v244_v7 }
 0x348   :  { %1317 = vtanh.f32 %v1593_v9 }
 0x34d   :  { %v187_v11 = vpop.permute.xlu1 %186 }
 0x34e   :  { %v1318_v12 = vpop.eup %1317  ;;  %v1596_v13 = vadd.f32 %v187_v11, %v179_v10 }
 0x34f   :  { %257 = vrot.lane.b32.xlu2 %v1318_v12, %s1484_s2 }
 0x350   :  { %1319 = vtanh.f32 %v1596_v13 }
 0x356   :  { %v1320_v14 = vpop.eup %1319 }
 0x357   :  { %192 = vrot.lane.b32.xlu0 %v1320_v14, %s1484_s2 }
 0x3a9   :  { %v258_v15 = vpop.permute.xlu2 %257 }
 0x3aa   :  { %v260_v16 = vmul.f32 %v258_v15, %v241_v61 }
 0x3ac   :  { %262 = vrot.lane.b32.xlu1 %v260_v16, %s1485_s13 }
 0x3c9   :  { %v193_v17 = vpop.permute.xlu0 %192 }
 0x3ca   :  { %v195_v18 = vmul.f32 %v193_v17, %v176_v4 }
 0x3cc   :  { %197 = vrot.lane.b32.xlu2 %v195_v18, %s1485_s13 }
 0x41e   :  { %v263_v29 = vpop.permute.xlu1 %262 }
 0x41f   :  { %1247 = vmatmul.msk.f32.vlgmr.msra.gmra.mxu3 %vm115_vm4, %v263_v29  ;;  %1248 = vmatmul.msk.f32.vlgmr.msrb.gmra.mxu0 %vm115_vm4, %v263_v29 }
 0x420   :  { %722 = vmatpush.msrb.mxu0 %v1540_v22  ;;  %657 = vmatpush.msra.mxu3 %v1603_v19 }
 0x422   :  { %723 = vmatpush.msrb.mxu0 %v1544_v24  ;;  %658 = vmatpush.msra.mxu3 %v1605_v20 }
 0x424   :  { %724 = vmatpush.msrb.mxu0 %v1550_v26  ;;  %659 = vmatpush.msra.mxu3 %v1609_v21 }
 0x426   :  { %v198_v32 = vpop.permute.xlu2 %197  ;;  %725 = vmatpush.msrb.mxu0 %v1562_v30  ;;  %660 = vmatpush.msra.mxu3 %v1614_v28 }
 0x427   :  { %1244 = vmatmul.msk.f32.vlgmr.msra.gmra.mxu2 %vm115_vm4, %v198_v32 }
 0x428   :  { %594 = vmatpush.msra.mxu2 %v1542_v23 }
 0x42a   :  { %595 = vmatpush.msra.mxu2 %v1548_v25 }
 0x42c   :  { %596 = vmatpush.msra.mxu2 %v1552_v27 }
 0x42e   :  { %597 = vmatpush.msra.mxu2 %v1564_v31 }
 0x49c   :  { %v303_v40 = vpop.f32.mrf.mxu0 }
 0x4a2   :  { %v283_v34 = vpop.f32.mrf.mxu3 }
 0x4a3   :  { %v371_v35 = vadd.f32 %v1251_v33, %v283_v34 }
 0x4a5   :  { %1321 = vtanh.f32 %v371_v35  ;;  %v1252_v43 = vmul.f32 -1.442695, %v371_v35  ;;  %v1257_v35 = vld [vmem:[%s1829_s0 + $0x6] sm:$0x3] }
 0x4aa   :  { %v218_v37 = vpop.f32.mrf.mxu2 }
 0x4ab   :  { %v1322_v38 = vpop.eup %1321  ;;  %v219_v39 = vadd.f32 %v1585_v36, %v218_v37 }
 0x4ac   :  { %394 = vrot.lane.b32.xlu0 %v1322_v38, %s1484_s2 }
 0x4ad   :  { %v306_v41 = vadd.f32 %v303_v40, %v219_v39 }
 0x4af   :  { %1323 = vtanh.f32 %v306_v41  ;;  %v1249_v45 = vmul.f32 -1.442695, %v306_v41 }
 0x4b0   :  { %1325 = vpow2.f32 %v1252_v43 }
 0x4b1   :  { %1327 = vpow2.f32 %v1249_v45 }
 0x4b5   :  { %v1324_v42 = vpop.eup %1323 }
 0x4b6   :  { %329 = vrot.lane.b32.xlu1 %v1324_v42, %s1484_s2  ;;  %v1326_v44 = vpop.eup %1325 }
 0x4b7   :  { %v375_v46 = vadd.f32 1.0, %v1326_v44  ;;  %v1328_v47 = vpop.eup %1327 }
 0x4b8   :  { %v310_v49 = vadd.f32 1.0, %v1328_v47 }
 0x4b9   :  { %1329 = vrcp.f32 %v375_v46  ;;  %v387_v56 = vand.u32 2147483648, %v375_v46  ;;  %vm381_vm14 = vweird.f32 %v375_v46  ;;  %v385_v57 = vand.u32 2147483647, %v375_v46 }
 0x4ba   :  { %1331 = vrcp.f32 %v310_v49  ;;  %v322_v2 = vand.u32 2147483648, %v310_v49  ;;  %vm316_vm2 = vweird.f32 %v310_v49  ;;  %v320_v3 = vand.u32 2147483647, %v310_v49 }
 0x4bb   :  { %v388_v60 = vor.u32 1.1754944e-38, %v387_v56  ;;  %vm386_vm0 = vcmp.eq.f32.partialorder %v385_v57, 8.507059e+37 }
 0x4bc   :  { %v323_v5 = vor.u32 1.1754944e-38, %v322_v2  ;;  %vm321_vm5 = vcmp.eq.f32.partialorder %v320_v3, 8.507059e+37 }
 0x4bf   :  { %v1330_v48 = vpop.eup %1329 }
 0x4c0   :  { %v377_v50 = vmul.f32 %v1330_v48, %v375_v46  ;;  %v1332_v52 = vpop.eup %1331  ;;  %vm382_vm13 = vweird.f32 %v1330_v48 }
 0x4c1   :  { %v312_v54 = vmul.f32 %v1332_v52, %v310_v49  ;;  %vm383_vm15 = vmor %vm381_vm14, %vm382_vm13  ;;  %vm317_vm1 = vweird.f32 %v1332_v52 }
 0x4c2   :  { %v378_v51 = vsub.f32 1.0, %v377_v50  ;;  %vm318_vm3 = vmor %vm316_vm2, %vm317_vm1 }
 0x4c3   :  { %v313_v58 = vsub.f32 1.0, %v312_v54 }
 0x4c4   :  { %v379_v53 = vmul.f32 %v1330_v48, %v378_v51 }
 0x4c5   :  { %v314_v61 = vmul.f32 %v1332_v52, %v313_v58 }
 0x4c6   :  { %v380_v55 = vadd.f32 %v1330_v48, %v379_v53 }
 0x4c7   :  { %v315_v1 = vadd.f32 %v1332_v52, %v314_v61 }
 0x4c8   :  { %v384_v59 = vsel %vm383_vm15, %v1330_v48, %v380_v55 }
 0x4c9   :  { %v389_v63 = vsel %vm386_vm0, %v388_v60, %v384_v59  ;;  %v319_v4 = vsel %vm318_vm3, %v1332_v52, %v315_v1 }
 0x4ca   :  { %v324_v7 = vsel %vm321_vm5, %v323_v5, %v319_v4  ;;  %v392_v10 = vmul.f32 %v389_v63, %v1593_v9 }
 0x4cb   :  { %v327_v15 = vmul.f32 %v324_v7, %v1596_v13 }
 0x51e   :  { %v395_v62 = vpop.permute.xlu0 %394 }
 0x51f   :  { %v397_v0 = vmul.f32 %v395_v62, %v389_v63 }
 0x521   :  { %399 = vrot.lane.b32.xlu2 %v397_v0, %s1485_s13 }
 0x528   :  { %v330_v6 = vpop.permute.xlu1 %329 }
 0x529   :  { %v332_v8 = vmul.f32 %v330_v6, %v324_v7 }
 0x52b   :  { %334 = vrot.lane.b32.xlu0 %v332_v8, %s1485_s13 }
 0x57b   :  { %v400_v11 = vpop.permute.xlu2 %399 }
 0x57c   :  { %v1655_v12 = vadd.f32 %v400_v11, %v392_v10 }
 0x57e   :  { %1333 = vtanh.f32 %v1655_v12 }
 0x584   :  { %v1334_v14 = vpop.eup %1333 }
 0x585   :  { %405 = vrot.lane.b32.xlu1 %v1334_v14, %s1484_s2 }
 0x59d   :  { %v335_v16 = vpop.permute.xlu0 %334 }
 0x59e   :  { %v1660_v17 = vadd.f32 %v335_v16, %v327_v15 }
 0x5a0   :  { %1335 = vtanh.f32 %v1660_v17 }
 0x5a6   :  { %v1336_v18 = vpop.eup %1335 }
 0x5a7   :  { %340 = vrot.lane.b32.xlu2 %v1336_v18, %s1484_s2 }
 0x5f7   :  { %v406_v29 = vpop.permute.xlu1 %405 }
 0x5f8   :  { %v408_v9 = vmul.f32 %v406_v29, %v389_v63 }
 0x5fa   :  { %410 = vrot.lane.b32.xlu0 %v408_v9, %s1485_s13 }
 0x601   :  { %v341_v32 = vpop.permute.xlu2 %340 }
 0x602   :  { %v343_v33 = vmul.f32 %v341_v32, %v324_v7 }
 0x604   :  { %345 = vrot.lane.b32.xlu1 %v343_v33, %s1485_s13 }
 0x66c   :  { %v411_v34 = vpop.permute.xlu0 %410 }
 0x66d   :  { %1253 = vmatmul.msk.f32.vlgmr.msrb.gmra.mxu2 %vm115_vm4, %v411_v34  ;;  %1254 = vmatmul.msk.f32.vlgmr.msrb.gmra.mxu3 %vm115_vm4, %v411_v34 }
 0x66e   :  { %870 = vmatpush.msrb.mxu3 %v1540_v22  ;;  %805 = vmatpush.msrb.mxu2 %v1603_v19 }
 0x670   :  { %871 = vmatpush.msrb.mxu3 %v1544_v24  ;;  %806 = vmatpush.msrb.mxu2 %v1605_v20 }
 0x672   :  { %872 = vmatpush.msrb.mxu3 %v1550_v26  ;;  %807 = vmatpush.msrb.mxu2 %v1609_v21 }
 0x674   :  { %873 = vmatpush.msrb.mxu3 %v1562_v30  ;;  %808 = vmatpush.msrb.mxu2 %v1614_v28 }
 0x676   :  { %v346_v13 = vpop.permute.xlu1 %345 }
 0x677   :  { %1250 = vmatmul.msk.f32.vlgmr.msrb.gmra.mxu1 %vm115_vm4, %v346_v13 }
 0x678   :  { %742 = vmatpush.msrb.mxu1 %v1542_v23 }
 0x67a   :  { %743 = vmatpush.msrb.mxu1 %v1548_v25 }
 0x67c   :  { %744 = vmatpush.msrb.mxu1 %v1552_v27 }
 0x67e   :  { %745 = vmatpush.msrb.mxu1 %v1564_v31 }
 0x6f0   :  { %v431_v37 = vpop.f32.mrf.mxu2  ;;  %v451_v41 = vpop.f32.mrf.mxu3 }
 0x6f1   :  { %v519_v38 = vadd.f32 %v1257_v35, %v431_v37 }
 0x6f3   :  { %1337 = vtanh.f32 %v519_v38  ;;  %v1258_v45 = vmul.f32 -1.442695, %v519_v38 }
 0x6f4   :  { %v366_v39 = vpop.f32.mrf.mxu1 }
 0x6f5   :  { %v367_v40 = vadd.f32 %v1585_v36, %v366_v39 }
 0x6f7   :  { %v454_v42 = vadd.f32 %v451_v41, %v367_v40 }
 0x6f9   :  { %v1338_v43 = vpop.eup %1337  ;;  %1339 = vtanh.f32 %v454_v42  ;;  %v1255_v50 = vmul.f32 -1.442695, %v454_v42 }
 0x6fa   :  { %542 = vrot.lane.b32.xlu2 %v1338_v43, %s1484_s2  ;;  %1341 = vpow2.f32 %v1258_v45 }
 0x6ff   :  { %v1340_v44 = vpop.eup %1339 }
 0x700   :  { %477 = vrot.lane.b32.xlu0 %v1340_v44, %s1484_s2  ;;  %v1342_v46 = vpop.eup %1341 }
 0x701   :  { %v523_v47 = vadd.f32 1.0, %v1342_v46 }
 0x703   :  { %1343 = vrcp.f32 %v523_v47  ;;  %v535_v54 = vand.u32 2147483648, %v523_v47  ;;  %vm529_vm7 = vweird.f32 %v523_v47  ;;  %v533_v56 = vand.u32 2147483647, %v523_v47 }
 0x704   :  { %1345 = vpow2.f32 %v1255_v50 }
 0x705   :  { %v536_v59 = vor.u32 1.1754944e-38, %v535_v54  ;;  %vm534_vm9 = vcmp.eq.f32.partialorder %v533_v56, 8.507059e+37 }
 0x709   :  { %v1344_v48 = vpop.eup %1343 }
 0x70a   :  { %v525_v49 = vmul.f32 %v1344_v48, %v523_v47  ;;  %vm530_vm6 = vweird.f32 %v1344_v48  ;;  %v1346_v55 = vpop.eup %1345 }
 0x70b   :  { %vm531_vm8 = vmor %vm529_vm7, %vm530_vm6  ;;  %v458_v58 = vadd.f32 1.0, %v1346_v55 }
 0x70c   :  { %v526_v51 = vsub.f32 1.0, %v525_v49 }
 0x70d   :  { %1347 = vrcp.f32 %v458_v58  ;;  %v470_v4 = vand.u32 2147483648, %v458_v58  ;;  %vm464_vm11 = vweird.f32 %v458_v58  ;;  %v468_v5 = vand.u32 2147483647, %v458_v58 }
 0x70e   :  { %v527_v52 = vmul.f32 %v1344_v48, %v526_v51 }
 0x70f   :  { %v471_v7 = vor.u32 1.1754944e-38, %v470_v4  ;;  %vm469_vm13 = vcmp.eq.f32.partialorder %v468_v5, 8.507059e+37 }
 0x710   :  { %v528_v53 = vadd.f32 %v1344_v48, %v527_v52 }
 0x712   :  { %v532_v57 = vsel %vm531_vm8, %v1344_v48, %v528_v53 }
 0x713   :  { %v537_v60 = vsel %vm534_vm9, %v536_v59, %v532_v57  ;;  %v1348_v63 = vpop.eup %1347 }
 0x714   :  { %v460_v0 = vmul.f32 %v1348_v63, %v458_v58  ;;  %vm465_vm10 = vweird.f32 %v1348_v63  ;;  %v540_v14 = vmul.f32 %v537_v60, %v1655_v12 }
 0x715   :  { %vm466_vm12 = vmor %vm464_vm11, %vm465_vm10 }
 0x716   :  { %v461_v1 = vsub.f32 1.0, %v460_v0 }
 0x718   :  { %v462_v2 = vmul.f32 %v1348_v63, %v461_v1 }
 0x71a   :  { %v463_v3 = vadd.f32 %v1348_v63, %v462_v2 }
 0x71c   :  { %v467_v6 = vsel %vm466_vm12, %v1348_v63, %v463_v3 }
 0x71d   :  { %v472_v10 = vsel %vm469_vm13, %v471_v7, %v467_v6 }
 0x71e   :  { %v475_v18 = vmul.f32 %v472_v10, %v1660_v17 }
 0x754   :  { %v543_v61 = vpop.permute.xlu2 %542 }
 0x755   :  { %v545_v62 = vmul.f32 %v543_v61, %v537_v60 }
 0x757   :  { %547 = vrot.lane.b32.xlu1 %v545_v62, %s1485_s13 }
 0x772   :  { %v478_v8 = vpop.permute.xlu0 %477 }
 0x773   :  { %v480_v11 = vmul.f32 %v478_v8, %v472_v10 }
 0x775   :  { %482 = vrot.lane.b32.xlu2 %v480_v11, %s1485_s13 }
 0x7c9   :  { %v548_v15 = vpop.permute.xlu1 %547 }
 0x7ca   :  { %v1690_v16 = vadd.f32 %v548_v15, %v540_v14 }
 0x7cc   :  { %1349 = vtanh.f32 %v1690_v16 }
 0x7cf   :  { %v483_v29 = vpop.permute.xlu2 %482 }
 0x7d0   :  { %v1694_v9 = vadd.f32 %v483_v29, %v475_v18 }
 0x7d2   :  { %v1350_v32 = vpop.eup %1349  ;;  %1351 = vtanh.f32 %v1694_v9 }
 0x7d3   :  { %553 = vrot.lane.b32.xlu0 %v1350_v32, %s1484_s2 }
 0x7d8   :  { %v1352_v33 = vpop.eup %1351 }
 0x7d9   :  { %488 = vrot.lane.b32.xlu1 %v1352_v33, %s1484_s2 }
 0x845   :  { %v554_v34 = vpop.permute.xlu0 %553 }
 0x846   :  { %v556_v12 = vmul.f32 %v554_v34, %v537_v60 }
 0x848   :  { %558 = vrot.lane.b32.xlu2 %v556_v12, %s1485_s13 }
 0x84b   :  { %v489_v13 = vpop.permute.xlu1 %488 }
 0x84c   :  { %v491_v35 = vmul.f32 %v489_v13, %v472_v10 }
 0x84e   :  { %493 = vrot.lane.b32.xlu0 %v491_v35, %s1485_s13 }
 0x8a2   :  { %v559_v17 = vpop.permute.xlu2 %558 }
 0x8a3   :  { %1259 = vmatmul.msk.f32.vlgmr.msra.gmra.mxu1 %vm115_vm4, %v559_v17  ;;  %1260 = vmatmul.msk.f32.vlgmr.msra.gmra.mxu2 %vm115_vm4, %v559_v17 }
 0x8a4   :  { %1018 = vmatpush.msra.mxu2 %v1540_v22  ;;  %953 = vmatpush.msra.mxu1 %v1603_v19  ;;  %v1263_v22 = vld [vmem:[%s1829_s0 + $0x8] sm:$0x3] }
 0x8a6   :  { %1019 = vmatpush.msra.mxu2 %v1544_v24  ;;  %954 = vmatpush.msra.mxu1 %v1605_v20 }
 0x8a8   :  { %1020 = vmatpush.msra.mxu2 %v1550_v26  ;;  %955 = vmatpush.msra.mxu1 %v1609_v21 }
 0x8aa   :  { %1021 = vmatpush.msra.mxu2 %v1562_v30  ;;  %956 = vmatpush.msra.mxu1 %v1614_v28 }
 0x8c0   :  { %v494_v37 = vpop.permute.xlu0 %493 }
 0x8c1   :  { %1256 = vmatmul.msk.f32.vlgmr.msra.gmra.mxu0 %vm115_vm4, %v494_v37 }
 0x8c2   :  { %890 = vmatpush.msra.mxu0 %v1542_v23 }
 0x8c4   :  { %891 = vmatpush.msra.mxu0 %v1548_v25 }
 0x8c6   :  { %892 = vmatpush.msra.mxu0 %v1552_v27 }
 0x8c8   :  { %893 = vmatpush.msra.mxu0 %v1564_v31 }
 0x920   :  { %v579_v24 = vpop.f32.mrf.mxu1 }
 0x921   :  { %v667_v26 = vadd.f32 %v1263_v22, %v579_v24 }
 0x923   :  { %1353 = vtanh.f32 %v667_v26  ;;  %v1264_v43 = vmul.f32 -1.442695, %v667_v26 }
 0x926   :  { %v599_v40 = vpop.f32.mrf.mxu2 }
 0x929   :  { %v1354_v30 = vpop.eup %1353 }
 0x92a   :  { %690 = vrot.lane.b32.xlu2 %v1354_v30, %s1484_s2 }
 0x93e   :  { %v514_v38 = vpop.f32.mrf.mxu0 }
 0x93f   :  { %v515_v39 = vadd.f32 %v1585_v36, %v514_v38 }
 0x941   :  { %v602_v41 = vadd.f32 %v599_v40, %v515_v39 }
 0x943   :  { %1355 = vtanh.f32 %v602_v41  ;;  %v1261_v58 = vmul.f32 -1.442695, %v602_v41 }
 0x944   :  { %1357 = vpow2.f32 %v1264_v43 }
 0x949   :  { %v1356_v42 = vpop.eup %1355 }
 0x94a   :  { %625 = vrot.lane.b32.xlu1 %v1356_v42, %s1484_s2  ;;  %v1358_v44 = vpop.eup %1357 }
 0x94b   :  { %v671_v45 = vadd.f32 1.0, %v1358_v44 }
 0x94d   :  { %1359 = vrcp.f32 %v671_v45  ;;  %v683_v51 = vand.u32 2147483648, %v671_v45  ;;  %vm677_vm15 = vweird.f32 %v671_v45  ;;  %v681_v52 = vand.u32 2147483647, %v671_v45 }
 0x94e   :  { %1361 = vpow2.f32 %v1261_v58 }
 0x94f   :  { %v684_v54 = vor.u32 1.1754944e-38, %v683_v51  ;;  %vm682_vm1 = vcmp.eq.f32.partialorder %v681_v52, 8.507059e+37 }
 0x953   :  { %v1360_v46 = vpop.eup %1359 }
 0x954   :  { %v673_v47 = vmul.f32 %v1360_v46, %v671_v45  ;;  %vm678_vm14 = vweird.f32 %v1360_v46  ;;  %v1362_v59 = vpop.eup %1361 }
 0x955   :  { %vm679_vm0 = vmor %vm677_vm15, %vm678_vm14  ;;  %v606_v60 = vadd.f32 1.0, %v1362_v59 }
 0x956   :  { %v674_v48 = vsub.f32 1.0, %v673_v47 }
 0x957   :  { %1363 = vrcp.f32 %v606_v60  ;;  %v618_v2 = vand.u32 2147483648, %v606_v60  ;;  %vm612_vm3 = vweird.f32 %v606_v60  ;;  %v616_v3 = vand.u32 2147483647, %v606_v60 }
 0x958   :  { %v675_v49 = vmul.f32 %v1360_v46, %v674_v48 }
 0x959   :  { %v619_v5 = vor.u32 1.1754944e-38, %v618_v2  ;;  %vm617_vm6 = vcmp.eq.f32.partialorder %v616_v3, 8.507059e+37 }
 0x95a   :  { %v676_v50 = vadd.f32 %v1360_v46, %v675_v49 }
 0x95c   :  { %v680_v53 = vsel %vm679_vm0, %v1360_v46, %v676_v50 }
 0x95d   :  { %v685_v56 = vsel %vm682_vm1, %v684_v54, %v680_v53  ;;  %v1364_v61 = vpop.eup %1363 }
 0x95e   :  { %v608_v62 = vmul.f32 %v1364_v61, %v606_v60  ;;  %vm613_vm2 = vweird.f32 %v1364_v61  ;;  %v688_v10 = vmul.f32 %v685_v56, %v1690_v16 }
 0x95f   :  { %vm614_vm5 = vmor %vm612_vm3, %vm613_vm2 }
 0x960   :  { %v609_v63 = vsub.f32 1.0, %v608_v62 }
 0x962   :  { %v610_v0 = vmul.f32 %v1364_v61, %v609_v63 }
 0x964   :  { %v611_v1 = vadd.f32 %v1364_v61, %v610_v0 }
 0x966   :  { %v615_v4 = vsel %vm614_vm5, %v1364_v61, %v611_v1 }
 0x967   :  { %v620_v7 = vsel %vm617_vm6, %v619_v5, %v615_v4 }
 0x968   :  { %v623_v18 = vmul.f32 %v620_v7, %v1694_v9 }
 0x984   :  { %v691_v55 = vpop.permute.xlu2 %690 }
 0x985   :  { %v693_v57 = vmul.f32 %v691_v55, %v685_v56 }
 0x987   :  { %695 = vrot.lane.b32.xlu1 %v693_v57, %s1485_s13 }
 0x9bc   :  { %v626_v6 = vpop.permute.xlu1 %625 }
 0x9bd   :  { %v628_v8 = vmul.f32 %v626_v6, %v620_v7 }
 0x9bf   :  { %630 = vrot.lane.b32.xlu0 %v628_v8, %s1485_s13 }
 0x9f9   :  { %v696_v11 = vpop.permute.xlu1 %695 }
 0x9fa   :  { %v1725_v14 = vadd.f32 %v696_v11, %v688_v10 }
 0x9fc   :  { %1365 = vtanh.f32 %v1725_v14 }
 0xa02   :  { %v1366_v15 = vpop.eup %1365 }
 0xa03   :  { %701 = vrot.lane.b32.xlu0 %v1366_v15, %s1484_s2 }
 0xa31   :  { %v631_v29 = vpop.permute.xlu0 %630 }
 0xa32   :  { %v1730_v32 = vadd.f32 %v631_v29, %v623_v18  ;;  %v1275_v18 = vld [vmem:[%s1829_s0 + $0xc] sm:$0x3] }
 0xa34   :  { %1367 = vtanh.f32 %v1730_v32 }
 0xa3a   :  { %v1368_v33 = vpop.eup %1367 }
 0xa3b   :  { %636 = vrot.lane.b32.xlu2 %v1368_v33, %s1484_s2 }
 0xa75   :  { %v702_v34 = vpop.permute.xlu0 %701 }
 0xa76   :  { %v704_v16 = vmul.f32 %v702_v34, %v685_v56 }
 0xa78   :  { %706 = vrot.lane.b32.xlu2 %v704_v16, %s1485_s13 }
 0xa95   :  { %v637_v12 = vpop.permute.xlu2 %636 }
 0xa96   :  { %v639_v13 = vmul.f32 %v637_v12, %v620_v7 }
 0xa98   :  { %641 = vrot.lane.b32.xlu1 %v639_v13, %s1485_s13 }
 0xad2   :  { %v707_v35 = vpop.permute.xlu2 %706 }
 0xad3   :  { %1265 = vmatmul.msk.f32.vlgmr.msrb.gmra.mxu0 %vm115_vm4, %v707_v35  ;;  %1266 = vmatmul.msk.f32.vlgmr.msrb.gmra.mxu1 %vm115_vm4, %v707_v35 }
 0xad4   :  { %1166 = vmatpush.msrb.mxu1 %v1542_v23  ;;  %1101 = vmatpush.msrb.mxu0 %v1603_v19  ;;  %v1269_v19 = vld [vmem:[%s1829_s0 + $0xa] sm:$0x3] }
 0xad6   :  { %1167 = vmatpush.msrb.mxu1 %v1548_v25  ;;  %1102 = vmatpush.msrb.mxu0 %v1605_v20 }
 0xad8   :  { %1168 = vmatpush.msrb.mxu1 %v1552_v27  ;;  %1103 = vmatpush.msrb.mxu0 %v1609_v21 }
 0xada   :  { %1169 = vmatpush.msrb.mxu1 %v1564_v31  ;;  %1104 = vmatpush.msrb.mxu0 %v1614_v28 }
 0xb0a   :  { %v642_v9 = vpop.permute.xlu1 %641 }
 0xb0b   :  { %1262 = vmatmul.msk.f32.vlgmr.msra.gmra.mxu3 %vm115_vm4, %v642_v9 }
 0xb0c   :  { %1038 = vmatpush.msra.mxu3 %v1542_v23 }
 0xb0e   :  { %1039 = vmatpush.msra.mxu3 %v1548_v25 }
 0xb10   :  { %1040 = vmatpush.msra.mxu3 %v1552_v27 }
 0xb12   :  { %1041 = vmatpush.msra.mxu3 %v1564_v31 }
 0xb50   :  { %v727_v20 = vpop.f32.mrf.mxu0  ;;  %v747_v23 = vpop.f32.mrf.mxu1 }
 0xb51   :  { %v815_v21 = vadd.f32 %v1269_v19, %v727_v20 }
 0xb53   :  { %1369 = vtanh.f32 %v815_v21  ;;  %v1270_v27 = vmul.f32 -1.442695, %v815_v21 }
 0xb59   :  { %v1370_v17 = vpop.eup %1369 }
 0xb5a   :  { %838 = vrot.lane.b32.xlu0 %v1370_v17, %s1484_s2 }
 0xb8e   :  { %v662_v28 = vpop.f32.mrf.mxu3 }
 0xb8f   :  { %v663_v37 = vadd.f32 %v1585_v36, %v662_v28 }
 0xb91   :  { %v750_v22 = vadd.f32 %v747_v23, %v663_v37 }
 0xb93   :  { %1371 = vtanh.f32 %v750_v22  ;;  %v1267_v48 = vmul.f32 -1.442695, %v750_v22 }
 0xb94   :  { %1373 = vpow2.f32 %v1270_v27 }
 0xb99   :  { %v1372_v25 = vpop.eup %1371 }
 0xb9a   :  { %773 = vrot.lane.b32.xlu1 %v1372_v25, %s1484_s2  ;;  %v1374_v31 = vpop.eup %1373 }
 0xb9b   :  { %v819_v24 = vadd.f32 1.0, %v1374_v31 }
 0xb9d   :  { %1375 = vrcp.f32 %v819_v24  ;;  %v831_v41 = vand.u32 2147483648, %v819_v24  ;;  %vm825_vm8 = vweird.f32 %v819_v24  ;;  %v829_v42 = vand.u32 2147483647, %v819_v24 }
 0xb9e   :  { %1377 = vpow2.f32 %v1267_v48 }
 0xb9f   :  { %v832_v44 = vor.u32 1.1754944e-38, %v831_v41  ;;  %vm830_vm10 = vcmp.eq.f32.partialorder %v829_v42, 8.507059e+37 }
 0xba3   :  { %v1376_v26 = vpop.eup %1375 }
 0xba4   :  { %v821_v30 = vmul.f32 %v1376_v26, %v819_v24  ;;  %vm826_vm7 = vweird.f32 %v1376_v26  ;;  %v1378_v49 = vpop.eup %1377 }
 0xba5   :  { %vm827_vm9 = vmor %vm825_vm8, %vm826_vm7  ;;  %v754_v50 = vadd.f32 1.0, %v1378_v49 }
 0xba6   :  { %v822_v38 = vsub.f32 1.0, %v821_v30 }
 0xba7   :  { %1379 = vrcp.f32 %v754_v50  ;;  %v766_v56 = vand.u32 2147483648, %v754_v50  ;;  %vm760_vm12 = vweird.f32 %v754_v50  ;;  %v764_v57 = vand.u32 2147483647, %v754_v50 }
 0xba8   :  { %v823_v39 = vmul.f32 %v1376_v26, %v822_v38 }
 0xba9   :  { %v767_v59 = vor.u32 1.1754944e-38, %v766_v56  ;;  %vm765_vm14 = vcmp.eq.f32.partialorder %v764_v57, 8.507059e+37 }
 0xbaa   :  { %v824_v40 = vadd.f32 %v1376_v26, %v823_v39 }
 0xbac   :  { %v828_v43 = vsel %vm827_vm9, %v1376_v26, %v824_v40 }
 0xbad   :  { %v833_v46 = vsel %vm830_vm10, %v832_v44, %v828_v43  ;;  %v1380_v51 = vpop.eup %1379 }
 0xbae   :  { %v756_v52 = vmul.f32 %v1380_v51, %v754_v50  ;;  %vm761_vm11 = vweird.f32 %v1380_v51  ;;  %v836_v63 = vmul.f32 %v833_v46, %v1725_v14 }
 0xbaf   :  { %vm762_vm13 = vmor %vm760_vm12, %vm761_vm11 }
 0xbb0   :  { %v757_v53 = vsub.f32 1.0, %v756_v52 }
 0xbb2   :  { %v758_v54 = vmul.f32 %v1380_v51, %v757_v53 }
 0xbb4   :  { %v759_v55 = vadd.f32 %v1380_v51, %v758_v54 }
 0xbb6   :  { %v763_v58 = vsel %vm762_vm13, %v1380_v51, %v759_v55 }
 0xbb7   :  { %v768_v61 = vsel %vm765_vm14, %v767_v59, %v763_v58 }
 0xbb8   :  { %v771_v3 = vmul.f32 %v768_v61, %v1730_v32 }
 0xbcc   :  { %v839_v45 = vpop.permute.xlu0 %838 }
 0xbcd   :  { %v841_v47 = vmul.f32 %v839_v45, %v833_v46 }
 0xbcf   :  { %843 = vrot.lane.b32.xlu2 %v841_v47, %s1485_s13 }
 0xc0c   :  { %v774_v60 = vpop.permute.xlu1 %773 }
 0xc0d   :  { %v776_v62 = vmul.f32 %v774_v60, %v768_v61 }
 0xc0f   :  { %778 = vrot.lane.b32.xlu0 %v776_v62, %s1485_s13 }
 0xc29   :  { %v844_v0 = vpop.permute.xlu2 %843 }
 0xc2a   :  { %v1760_v1 = vadd.f32 %v844_v0, %v836_v63 }
 0xc2c   :  { %1381 = vtanh.f32 %v1760_v1 }
 0xc32   :  { %v1382_v2 = vpop.eup %1381 }
 0xc33   :  { %849 = vrot.lane.b32.xlu1 %v1382_v2, %s1484_s2  ;;  %v1281_v2 = vld [vmem:[%s1829_s0 + $0xe] sm:$0x3] }
 0xc81   :  { %v779_v4 = vpop.permute.xlu0 %778 }
 0xc82   :  { %v1765_v5 = vadd.f32 %v779_v4, %v771_v3 }
 0xc84   :  { %1383 = vtanh.f32 %v1765_v5 }
 0xc8a   :  { %v1384_v6 = vpop.eup %1383 }
 0xc8b   :  { %784 = vrot.lane.b32.xlu2 %v1384_v6, %s1484_s2 }
 0xca5   :  { %v850_v7 = vpop.permute.xlu1 %849 }
 0xca6   :  { %v852_v8 = vmul.f32 %v850_v7, %v833_v46 }
 0xca8   :  { %854 = vrot.lane.b32.xlu0 %v852_v8, %s1485_s13 }
 0xce5   :  { %v785_v10 = vpop.permute.xlu2 %784 }
 0xce6   :  { %v787_v11 = vmul.f32 %v785_v10, %v768_v61 }
 0xce8   :  { %789 = vrot.lane.b32.xlu1 %v787_v11, %s1485_s13 }
 0xd1a   :  { %v855_v14 = vpop.permute.xlu0 %854 }
 0xd1b   :  { %1271 = vmatmul.msk.f32.vlgmr.msrb.gmra.mxu3 %vm115_vm4, %v855_v14  ;;  %1272 = vmatmul.msk.f32.vlgmr.msra.gmra.mxu0 %vm115_vm4, %v855_v14 }
 0xd5a   :  { %v790_v15 = vpop.permute.xlu1 %789 }
 0xd5b   :  { %1268 = vmatmul.msk.f32.vlgmr.msrb.gmra.mxu2 %vm115_vm4, %v790_v15  ;;  %v1804_v15 = vld [vmem:[%s1832_s3] ss:$0 sm:$0xff] }
 0xd98   :  { %v895_v35 = vpop.f32.mrf.mxu0 }
 0xd9e   :  { %v875_v29 = vpop.f32.mrf.mxu3 }
 0xd9f   :  { %v963_v32 = vadd.f32 %v1275_v18, %v875_v29 }
 0xda1   :  { %1385 = vtanh.f32 %v963_v32  ;;  %v1276_v34 = vmul.f32 -1.442695, %v963_v32 }
 0xda3   :  { %1387 = vpow2.f32 %v1276_v34 }
 0xda7   :  { %v1386_v33 = vpop.eup %1385 }
 0xda8   :  { %986 = vrot.lane.b32.xlu2 %v1386_v33, %s1484_s2 }
 0xda9   :  { %v1388_v12 = vpop.eup %1387 }
 0xdaa   :  { %v967_v19 = vadd.f32 1.0, %v1388_v12 }
 0xdac   :  { %v979_v22 = vand.u32 2147483648, %v967_v19  ;;  %vm973_vm0 = vweird.f32 %v967_v19  ;;  %v977_v25 = vand.u32 2147483647, %v967_v19 }
 0xdae   :  { %vm978_vm2 = vcmp.eq.f32.partialorder %v977_v25, 8.507059e+37 }
 0xdde   :  { %v810_v16 = vpop.f32.mrf.mxu2 }
 0xddf   :  { %v811_v13 = vadd.f32 %v1585_v36, %v810_v16  ;;  %v980_v36 = vor.u32 1.1754944e-38, %v979_v22 }
 0xde1   :  { %v898_v9 = vadd.f32 %v895_v35, %v811_v13 }
 0xde3   :  { %1389 = vtanh.f32 %v898_v9  ;;  %v1273_v30 = vmul.f32 -1.442695, %v898_v9 }
 0xde4   :  { %1391 = vrcp.f32 %v967_v19 }
 0xde5   :  { %1393 = vpow2.f32 %v1273_v30 }
 0xde9   :  { %v1390_v20 = vpop.eup %1389 }
 0xdea   :  { %921 = vrot.lane.b32.xlu0 %v1390_v20, %s1484_s2  ;;  %v1392_v21 = vpop.eup %1391 }
 0xdeb   :  { %v969_v17 = vmul.f32 %v1392_v21, %v967_v19  ;;  %vm974_vm15 = vweird.f32 %v1392_v21  ;;  %v1394_v38 = vpop.eup %1393 }
 0xdec   :  { %vm975_vm1 = vmor %vm973_vm0, %vm974_vm15  ;;  %v902_v39 = vadd.f32 1.0, %v1394_v38 }
 0xded   :  { %v970_v28 = vsub.f32 1.0, %v969_v17 }
 0xdee   :  { %1395 = vrcp.f32 %v902_v39  ;;  %v914_v45 = vand.u32 2147483648, %v902_v39  ;;  %vm908_vm5 = vweird.f32 %v902_v39  ;;  %v912_v46 = vand.u32 2147483647, %v902_v39 }
 0xdef   :  { %v971_v37 = vmul.f32 %v1392_v21, %v970_v28 }
 0xdf0   :  { %v915_v48 = vor.u32 1.1754944e-38, %v914_v45  ;;  %vm913_vm7 = vcmp.eq.f32.partialorder %v912_v46, 8.507059e+37 }
 0xdf1   :  { %v972_v23 = vadd.f32 %v1392_v21, %v971_v37 }
 0xdf3   :  { %v976_v27 = vsel %vm975_vm1, %v1392_v21, %v972_v23 }
 0xdf4   :  { %v981_v24 = vsel %vm978_vm2, %v980_v36, %v976_v27  ;;  %v1396_v40 = vpop.eup %1395 }
 0xdf5   :  { %v904_v41 = vmul.f32 %v1396_v40, %v902_v39  ;;  %vm909_vm3 = vweird.f32 %v1396_v40  ;;  %v984_v52 = vmul.f32 %v981_v24, %v1760_v1 }
 0xdf6   :  { %vm910_vm6 = vmor %vm908_vm5, %vm909_vm3  ;;  %vm1223_vm3 = vcmask 254976   ;;  %vm1232_vm5 = vcmask 1024  }
 0xdf7   :  { %v905_v42 = vsub.f32 1.0, %v904_v41 }
 0xdf9   :  { %v906_v43 = vmul.f32 %v1396_v40, %v905_v42 }
 0xdfb   :  { %v907_v44 = vadd.f32 %v1396_v40, %v906_v43 }
 0xdfd   :  { %v911_v47 = vsel %vm910_vm6, %v1396_v40, %v907_v44 }
 0xdfe   :  { %v916_v50 = vsel %vm913_vm7, %v915_v48, %v911_v47 }
 0xdff   :  { %v919_v56 = vmul.f32 %v916_v50, %v1765_v5 }
 0xe02   :  { %v987_v31 = vpop.permute.xlu2 %986 }
 0xe03   :  { %v989_v26 = vmul.f32 %v987_v31, %v981_v24 }
 0xe05   :  { %991 = vrot.lane.b32.xlu1 %v989_v26, %s1485_s13 }
 0xe5c   :  { %v922_v49 = vpop.permute.xlu0 %921 }
 0xe5d   :  { %v924_v51 = vmul.f32 %v922_v49, %v916_v50 }
 0xe5f   :  { %926 = vrot.lane.b32.xlu2 %v924_v51, %s1485_s13 }
 0xe77   :  { %v992_v53 = vpop.permute.xlu1 %991 }
 0xe78   :  { %v1783_v54 = vadd.f32 %v992_v53, %v984_v52 }
 0xe7a   :  { %1397 = vtanh.f32 %v1783_v54 }
 0xe80   :  { %v1398_v55 = vpop.eup %1397 }
 0xe81   :  { %997 = vrot.lane.b32.xlu0 %v1398_v55, %s1484_s2 }
 0xeb9   :  { %v927_v57 = vpop.permute.xlu2 %926 }
 0xeba   :  { %v1788_v58 = vadd.f32 %v927_v57, %v919_v56 }
 0xebc   :  { %1399 = vtanh.f32 %v1788_v58 }
 0xec2   :  { %v1400_v59 = vpop.eup %1399 }
 0xec3   :  { %932 = vrot.lane.b32.xlu1 %v1400_v59, %s1484_s2 }
 0xef3   :  { %v998_v60 = vpop.permute.xlu0 %997 }
 0xef4   :  { %v1000_v61 = vmul.f32 %v998_v60, %v981_v24 }
 0xef6   :  { %1002 = vrot.lane.b32.xlu2 %v1000_v61, %s1485_s13 }
 0xf35   :  { %v933_v62 = vpop.permute.xlu1 %932 }
 0xf36   :  { %v935_v63 = vmul.f32 %v933_v62, %v916_v50 }
 0xf38   :  { %937 = vrot.lane.b32.xlu0 %v935_v63, %s1485_s13 }
 0xf50   :  { %v1003_v0 = vpop.permute.xlu2 %1002 }
 0xf51   :  { %1277 = vmatmul.msk.f32.vlgmr.msra.gmra.mxu2 %vm115_vm4, %v1003_v0  ;;  %1278 = vmatmul.msk.f32.vlgmr.msra.gmra.mxu3 %vm115_vm4, %v1003_v0  ;;  %v1295_v0 = vld [vmem:[%s1833_s4] ss:$0 sm:$0xff] }
 0xfaa   :  { %v938_v1 = vpop.permute.xlu0 %937 }
 0xfab   :  { %1274 = vmatmul.msk.f32.vlgmr.msra.gmra.mxu1 %vm115_vm4, %v938_v1 }
 0xfd4   :  { %v1023_v3 = vpop.f32.mrf.mxu2  ;;  %v1043_v32 = vpop.f32.mrf.mxu3 }
 0xfd5   :  { %v1111_v4 = vadd.f32 %v1281_v2, %v1023_v3 }
 0xfd7   :  { %1401 = vtanh.f32 %v1111_v4  ;;  %v1282_v6 = vmul.f32 -1.442695, %v1111_v4 }
 0xfd9   :  { %1403 = vpow2.f32 %v1282_v6 }
 0xfdd   :  { %v1402_v5 = vpop.eup %1401 }
 0xfde   :  { %1134 = vrot.lane.b32.xlu2 %v1402_v5, %s1484_s2 }
 0xfdf   :  { %v1404_v7 = vpop.eup %1403 }
 0xfe0   :  { %v1115_v8 = vadd.f32 1.0, %v1404_v7 }
 0xfe2   :  { %1405 = vrcp.f32 %v1115_v8  ;;  %v1127_v12 = vand.u32 2147483648, %v1115_v8  ;;  %vm1121_vm9 = vweird.f32 %v1115_v8  ;;  %v1125_v35 = vand.u32 2147483647, %v1115_v8 }
 0xfe4   :  { %v1128_v19 = vor.u32 1.1754944e-38, %v1127_v12  ;;  %vm1126_vm11 = vcmp.eq.f32.partialorder %v1125_v35, 8.507059e+37 }
 0xfe8   :  { %v1406_v10 = vpop.eup %1405 }
 0xfe9   :  { %v1117_v11 = vmul.f32 %v1406_v10, %v1115_v8  ;;  %vm1122_vm8 = vweird.f32 %v1406_v10 }
 0xfea   :  { %vm1123_vm10 = vmor %vm1121_vm9, %vm1122_vm8 }
 0xfeb   :  { %v1118_v29 = vsub.f32 1.0, %v1117_v11 }
 0xfed   :  { %v1119_v34 = vmul.f32 %v1406_v10, %v1118_v29 }
 0xfef   :  { %v1120_v16 = vadd.f32 %v1406_v10, %v1119_v34 }
 0xff1   :  { %v1124_v9 = vsel %vm1123_vm10, %v1406_v10, %v1120_v16 }
 0xff2   :  { %v1129_v21 = vsel %vm1126_vm11, %v1128_v19, %v1124_v9  ;;  %v1296_v19 = vld [vmem:[#allocation2] ss:$0 sm:$0xff] }
 0xff3   :  { %v1132_v42 = vmul.f32 %v1129_v21, %v1783_v54 }
0x1028   :  { %v958_v14 = vpop.f32.mrf.mxu1 }
0x1029   :  { %v959_v18 = vadd.f32 %v1804_v15, %v958_v14 }
0x102b   :  { %v1046_v33 = vadd.f32 %v1043_v32, %v959_v18 }
0x102d   :  { %1407 = vtanh.f32 %v1046_v33  ;;  %v1279_v28 = vmul.f32 -1.442695, %v1046_v33 }
0x102f   :  { %1409 = vpow2.f32 %v1279_v28 }
0x1033   :  { %v1408_v13 = vpop.eup %1407 }
0x1034   :  { %1069 = vrot.lane.b32.xlu1 %v1408_v13, %s1484_s2 }
0x1035   :  { %v1410_v37 = vpop.eup %1409 }
0x1036   :  { %v1050_v23 = vadd.f32 1.0, %v1410_v37 }
0x1038   :  { %v1135_v20 = vpop.permute.xlu2 %1134  ;;  %1411 = vrcp.f32 %v1050_v23  ;;  %v1062_v24 = vand.u32 2147483648, %v1050_v23  ;;  %vm1056_vm13 = vweird.f32 %v1050_v23  ;;  %v1060_v26 = vand.u32 2147483647, %v1050_v23 }
0x1039   :  { %v1137_v17 = vmul.f32 %v1135_v20, %v1129_v21 }
0x103a   :  { %v1063_v38 = vor.u32 1.1754944e-38, %v1062_v24  ;;  %vm1061_vm15 = vcmp.eq.f32.partialorder %v1060_v26, 8.507059e+37 }
0x103c   :  { %1139 = vrot.lane.b32.xlu1 %v1137_v17, %s1485_s13 }
0x103e   :  { %v1412_v22 = vpop.eup %1411 }
0x103f   :  { %v1052_v25 = vmul.f32 %v1412_v22, %v1050_v23  ;;  %vm1057_vm12 = vweird.f32 %v1412_v22 }
0x1040   :  { %vm1058_vm14 = vmor %vm1056_vm13, %vm1057_vm12 }
0x1041   :  { %v1053_v27 = vsub.f32 1.0, %v1052_v25 }
0x1043   :  { %v1054_v36 = vmul.f32 %v1412_v22, %v1053_v27 }
0x1045   :  { %v1055_v31 = vadd.f32 %v1412_v22, %v1054_v36 }
0x1047   :  { %v1059_v30 = vsel %vm1058_vm14, %v1412_v22, %v1055_v31 }
0x1048   :  { %v1064_v40 = vsel %vm1061_vm15, %v1063_v38, %v1059_v30 }
0x1049   :  { %v1067_v46 = vmul.f32 %v1064_v40, %v1788_v58 }
0x10a6   :  { %v1070_v39 = vpop.permute.xlu1 %1069 }
0x10a7   :  { %v1072_v41 = vmul.f32 %v1070_v39, %v1064_v40 }
0x10a9   :  { %1074 = vrot.lane.b32.xlu0 %v1072_v41, %s1485_s13 }
0x10ae   :  { %v1140_v43 = vpop.permute.xlu1 %1139 }
0x10af   :  { %v1142_v44 = vadd.f32 %v1140_v43, %v1132_v42 }
0x10b1   :  { %1413 = vtanh.f32 %v1142_v44 }
0x10b7   :  { %v1414_v45 = vpop.eup %1413 }
0x10b8   :  { %1145 = vrot.lane.b32.xlu0 %v1414_v45, %s1484_s2 }
0x111b   :  { %v1075_v47 = vpop.permute.xlu0 %1074 }
0x111c   :  { %v1077_v48 = vadd.f32 %v1075_v47, %v1067_v46 }
0x111e   :  { %1415 = vtanh.f32 %v1077_v48 }
0x1124   :  { %v1416_v49 = vpop.eup %1415 }
0x1125   :  { %1080 = vrot.lane.b32.xlu2 %v1416_v49, %s1484_s2 }
0x112a   :  { %v1146_v50 = vpop.permute.xlu0 %1145 }
0x112b   :  { %v1148_v51 = vmul.f32 %v1146_v50, %v1129_v21 }
0x112d   :  { %1150 = vrot.lane.b32.xlu2 %v1148_v51, %s1485_s13 }
0x117f   :  { %v1081_v52 = vpop.permute.xlu2 %1080 }
0x1180   :  { %v1083_v53 = vmul.f32 %v1081_v52, %v1064_v40 }
0x1182   :  { %1085 = vrot.lane.b32.xlu1 %v1083_v53, %s1485_s13 }
0x1187   :  { %v1151_v54 = vpop.permute.xlu2 %1150 }
0x1188   :  { %1283 = vmatmul.msk.f32.vlgmr.msrb.gmra.mxu1 %vm115_vm4, %v1151_v54 }
0x11f4   :  { %v1086_v55 = vpop.permute.xlu1 %1085 }
0x11f5   :  { %1280 = vmatmul.msk.f32.vlgmr.msrb.gmra.mxu0 %vm115_vm4, %v1086_v55 }
0x1205   :  { %v1171_v58 = vpop.f32.mrf.mxu1 }
0x1272   :  { %v1106_v56 = vpop.f32.mrf.mxu0 }
0x1273   :  { %v1107_v57 = vadd.f32 %v1804_v15, %v1106_v56 }
0x1275   :  { %v1174_v59 = vadd.f32 %v1171_v58, %v1107_v57 }
0x1277   :  { %1417 = vtanh.f32 %v1174_v59  ;;  %v1284_v61 = vmul.f32 -1.442695, %v1174_v59 }
0x1279   :  { %1419 = vpow2.f32 %v1284_v61 }
0x127d   :  { %v1418_v60 = vpop.eup %1417 }
0x127e   :  { %1197 = vrot.lane.b32.xlu0 %v1418_v60, %s1484_s2 }
0x127f   :  { %v1420_v62 = vpop.eup %1419 }
0x1280   :  { %v1178_v63 = vadd.f32 1.0, %v1420_v62 }
0x1282   :  { %1421 = vrcp.f32 %v1178_v63  ;;  %v1190_v6 = vand.u32 2147483648, %v1178_v63  ;;  %vm1184_vm0 = vweird.f32 %v1178_v63  ;;  %v1188_v7 = vand.u32 2147483647, %v1178_v63 }
0x1284   :  { %v1191_v10 = vor.u32 1.1754944e-38, %v1190_v6  ;;  %vm1189_vm2 = vcmp.eq.f32.partialorder %v1188_v7, 8.507059e+37 }
0x1286   :  { %1215 = vrot.lane.b32.xlu0 %v1295_v0, %s1486_s8 }
0x1288   :  { %v1422_v1 = vpop.eup %1421 }
0x1289   :  { %v1180_v2 = vmul.f32 %v1422_v1, %v1178_v63  ;;  %vm1185_vm4 = vweird.f32 %v1422_v1 }
0x128a   :  { %vm1186_vm1 = vmor %vm1184_vm0, %vm1185_vm4 }
0x128b   :  { %v1181_v3 = vsub.f32 1.0, %v1180_v2 }
0x128d   :  { %v1182_v4 = vmul.f32 %v1422_v1, %v1181_v3 }
0x128f   :  { %v1183_v5 = vadd.f32 %v1422_v1, %v1182_v4 }
0x1291   :  { %v1187_v8 = vsel %vm1186_vm1, %v1422_v1, %v1183_v5 }
0x1292   :  { %v1192_v14 = vsel %vm1189_vm2, %v1191_v10, %v1187_v8 }
0x1293   :  { %v1195_v18 = vmul.f32 %v1192_v14, %v1077_v48 }
0x12f0   :  { %v1198_v11 = vpop.permute.xlu0 %1197 }
0x12f1   :  { %v1200_v15 = vmul.f32 %v1198_v11, %v1192_v14 }
0x12f3   :  { %1202 = vrot.lane.b32.xlu1 %v1200_v15, %s1485_s13 }
0x12f8   :  { %v1216_v16 = vpop.permute.xlu0 %1215 }
0x1365   :  { %v1203_v29 = vpop.permute.xlu1 %1202 }
0x1366   :  { %v1205_v32 = vadd.f32 %v1203_v29, %v1195_v18 }
0x1368   :  { %1423 = vtanh.f32 %v1205_v32 }
0x136e   :  { %v1424_v33 = vpop.eup %1423 }
0x136f   :  { %1208 = vrot.lane.b32.xlu2 %v1424_v33, %s1484_s2 }
0x13c9   :  { %v1209_v34 = vpop.permute.xlu2 %1208 }
0x13ca   :  { %v1211_v12 = vmul.f32 %v1209_v34, %v1192_v14 }
0x13cc   :  { %v1218_v13 = vmul.f32 %v1216_v16, %v1211_v12 }
0x13ce   :  { %1220 = vrot.lane.b32.xlu1 %v1218_v13, %s1485_s13 }
0x1440   :  { %v1221_v35 = vpop.permute.xlu1 %1220 }
0x1441   :  { %v1224_v9 = vsel %vm1223_vm3, %v1221_v35, 0.0 }
0x1442   :  { %1225 = vadd.xlane.f32.xlu2 %v1224_v9 }
0x14b5   :  { %v1226_v20 = vpop.xlane.xlu2 %1225 }
0x14b6   :  { %v1231_v21 = vadd.f32 %v1296_v19, %v1226_v20 }
0x14b8   :  { %1233 = vst.msk [vmem:[%s1835_s6] sm:$0x3] %vm1232_vm5, %v1231_v21 }
0x14b9   :  { %1238 = vsyncpa [#allocation4], 1 }
0x14ba   :  { %1239 = vsyncpa [#allocation6], 1 }

</bundles_post_ra>
